<compile_context>
chip_gen: v6e
topology: v6e:2x2x1
jax: 0.10.0
libtpu: 0.0.40
codegen_flags: <defaults>
</compile_context>

<pallas_src>
import jax
import jax.numpy as jnp
import numpy as np
from jax import lax
from jax.experimental import pallas as pl
from jax.experimental.pallas import tpu as pltpu


def _merged_dy_weights(w_hwio, w_in, w_out, shift, dtype):
    """Fold the 3 horizontal taps of a 3x3 conv into off-diagonal (Ci,Co) blocks.

    Returns (3, w_in*Ci, w_out*Co).  Row (win*Ci + ci), col (w*Co + co) holds
    w_hwio[ky, win - w + shift, ci, co] when that horizontal tap index lies in
    [0, 3), else 0.  A lane-packed slab (rows, w_in*Ci) matmul'd with this matrix
    performs the full horizontal extent of the conv for vertical tap ky, with the
    "SAME" boundary handled by the absent blocks (== zero padding).
      conv1: w_in = W+2 (input slab is spatially padded), shift = 0
      conv2: w_in = W   (activation slab is unpadded),     shift = 1
    """
    kh, kw, ci, co = w_hwio.shape
    win = jnp.arange(w_in)[:, None]
    wout = jnp.arange(w_out)[None, :]
    kx = win - wout + shift                                 # (w_in, w_out)
    sel = (kx >= 0) & (kx < kw)
    g = w_hwio[:, jnp.clip(kx, 0, kw - 1), :, :]            # (kh, w_in, w_out, ci, co)
    g = jnp.where(sel[None, :, :, None, None], g, 0.0)
    g = jnp.transpose(g, (0, 1, 3, 2, 4))                   # (kh, w_in, ci, w_out, co)
    return g.reshape(kh, w_in * ci, w_out * co).astype(dtype)


def _tile_bias(b, W):
    """(Co,) or (1,Co) bias -> (1, W*Co) f32; lane n holds b[n % Co]."""
    return jnp.tile(jnp.asarray(b, jnp.float32).reshape(1, -1), (1, W))


def _choose_block_b(B, H, max_rows=512):
    """Batch elements per grid step: fill the MXU M dim (up to ~max_rows rows) but
    keep >= 2 grid steps whenever B >= 2 so both v7x TensorCores get work."""
    best = 1
    for d in range(1, B + 1):
        if B % d != 0:
            continue
        if d * H > max_rows:
            continue
        if B > 1 and d > B // 2:
            continue
        best = d
    return best


def _attention2_call(B, H, W, Ci, Co, BB, mxu_dtype, single_buffer_weights):
    WpCi = (W + 2) * Ci
    WCo = W * Co
    BBH = BB * H
    f32 = jnp.float32

    def kernel(xp_ref, w1_ref, b1_ref, w2_ref, b2_ref, o_ref):
        xs = xp_ref[...]                                    # (BB, H+2, (W+2)*Ci)

        # ---- conv1 + bias + relu: 3 accumulating MXU dots (one per vertical tap) ----
        x1 = jnp.zeros((BBH, WCo), f32)
        for ky in range(3):
            lhs = xs[:, ky:ky + H, :].reshape(BBH, WpCi)
            x1 = x1 + jnp.dot(lhs, w1_ref[ky], preferred_element_type=f32)
        x1 = jnp.maximum(x1 + b1_ref[...], 0.0)             # (BB*H, W*Co) f32

        # ---- conv2 + bias: vertical zero-pad via row concat (stays at 128 lanes);
        #      the horizontal boundary is already encoded in the merged weights ----
        x1c = x1.reshape(BB, H, WCo)
        if mxu_dtype != f32:
            x1c = x1c.astype(mxu_dtype)
        zrow = jnp.zeros((BB, 1, WCo), x1c.dtype)
        x1p = jnp.concatenate([zrow, x1c, zrow], axis=1)    # (BB, H+2, W*Co)
        x2 = jnp.zeros((BBH, WCo), f32)
        for ky in range(3):
            lhs = x1p[:, ky:ky + H, :].reshape(BBH, WCo)
            x2 = x2 + jnp.dot(lhs, w2_ref[ky], preferred_element_type=f32)
        x2 = x2 + b2_ref[...]

        # ---- softmax over W (stride-Co lane groups == torch softmax(dim=-1) on NCHW) ----
        if W & (W - 1) == 0:
            # lane-roll butterfly on the XLU; exact because the lane extent is W*Co.
            m = x2
            shift = Co
            while shift < WCo:
                m = jnp.maximum(m, pltpu.roll(m, shift=shift, axis=1))
                shift *= 2
            e = jnp.exp(x2 - m)
            s = e
            shift = Co
            while shift < WCo:
                s = s + pltpu.roll(s, shift=shift, axis=1)
                shift *= 2
            sm = e * pl.reciprocal(s, approx=False)
        else:
            # TODO(synk): pad W to the next power of two with -inf columns instead of
            # this sublane-reduction fallback if non-power-of-two W becomes common.
            x2_3 = x2.reshape(BBH, W, Co)
            m = jnp.max(x2_3, axis=1, keepdims=True)
            e = jnp.exp(x2_3 - m)
            s = jnp.sum(e, axis=1, keepdims=True)
            sm = (e * pl.reciprocal(s, approx=False)).reshape(BBH, WCo)

        out = sm * x1
        o_ref[...] = out.reshape(BB, H, WCo).astype(o_ref.dtype)

    def wspec(shape):
        # Grid-invariant operands: single-buffer them (their block index never changes).
        if single_buffer_weights:
            return pl.BlockSpec(shape, lambda g: (0,) * len(shape),
                                pipeline_mode=pl.Buffered(1))
        return pl.BlockSpec(shape, lambda g: (0,) * len(shape))

    grid_spec = pltpu.PrefetchScalarGridSpec(
        num_scalar_prefetch=0,
        grid=(B // BB,),
        in_specs=[
            pl.BlockSpec((BB, H + 2, WpCi), lambda g: (g, 0, 0)),
            wspec((3, WpCi, WCo)),
            wspec((1, WCo)),
            wspec((3, WCo, WCo)),
            wspec((1, WCo)),
        ],
        out_specs=pl.BlockSpec((BB, H, WCo), lambda g: (g, 0, 0)),
    )

    w_itemsize = jnp.dtype(mxu_dtype).itemsize
    cost = pl.CostEstimate(
        # real MXU work of the merged (W-inflated) weight matrices
        flops=2 * B * H * WCo * (3 * WpCi + 3 * WCo),
        transcendentals=B * H * WCo,
        bytes_accessed=(B * (H + 2) * WpCi * w_itemsize          # padded input slab
                        + 3 * (WpCi + WCo) * WCo * w_itemsize    # merged conv weights
                        + 2 * WCo * 4                            # biases (f32)
                        + B * H * WCo * 4),                      # output (f32)
    )

    return pl.pallas_call(
        kernel,
        out_shape=jax.ShapeDtypeStruct((B, H, WCo), jnp.float32),
        grid_spec=grid_spec,
        compiler_params=pltpu.CompilerParams(
            dimension_semantics=("parallel",)),
        cost_estimate=cost,
    )


def attention2(x_nhwc, w1, b1, w2, b2, *, block_b=None, mxu_dtype=jnp.float32):
    """Attention2 forward.  x_nhwc: (B,H,W,Ci) f32, w1: (3,3,Ci,Co) HWIO, w2: (3,3,Co,Co).

    Returns (B, H, W, Co) f32.  mxu_dtype=jnp.bfloat16 halves weight/activation DMA on
    v6e/v7x (accumulation stays f32); f32 is the default for tight accuracy.
    """
    B, H, W, Ci = x_nhwc.shape
    Co = w1.shape[-1]
    BB = _choose_block_b(B, H) if block_b is None else block_b
    assert B % BB == 0

    # ---- wrapper-side layout plumbing (everything MXU-facing pre-cast here) ----
    xp = jnp.pad(x_nhwc, ((0, 0), (1, 1), (1, 1), (0, 0)))
    xp = xp.reshape(B, H + 2, (W + 2) * Ci).astype(mxu_dtype)   # lane = wp*Ci + ci
    w1m = _merged_dy_weights(w1, W + 2, W, 0, mxu_dtype)        # (3, (W+2)*Ci, W*Co)
    w2m = _merged_dy_weights(w2, W, W, 1, mxu_dtype)            # (3, W*Co,     W*Co)
    b1t = _tile_bias(b1, W)                                     # (1, W*Co) f32
    b2t = _tile_bias(b2, W)

    args = (xp, w1m, b1t, w2m, b2t)
    try:
        out = _attention2_call(B, H, W, Ci, Co, BB, mxu_dtype, True)(*args)
    except Exception:
        # This JAX build rejected pipeline_mode=pl.Buffered(1) on top-level BlockSpecs;
        # fall back to default (double-buffered) weights -- only a VMEM-footprint delta.
        out = _attention2_call(B, H, W, Ci, Co, BB, mxu_dtype, False)(*args)

    # lane-dense (B, H, W*Co) slab back to NHWC
    return out.reshape(B, H, W, Co)


def attention2_ref(x_nhwc, w1, b1, w2, b2):
    """Pure-JAX reference (NHWC convs via lax.conv_general_dilated)."""
    dn = lax.conv_dimension_numbers(x_nhwc.shape, w1.shape, ("NHWC", "HWIO", "NHWC"))
    x1 = lax.conv_general_dilated(x_nhwc, w1, (1, 1), "SAME",
                                  dimension_numbers=dn) + b1.reshape(1, 1, 1, -1)
    x1 = jnp.maximum(x1, 0.0)
    dn2 = lax.conv_dimension_numbers(x1.shape, w2.shape, ("NHWC", "HWIO", "NHWC"))
    x2 = lax.conv_general_dilated(x1, w2, (1, 1), "SAME",
                                  dimension_numbers=dn2) + b2.reshape(1, 1, 1, -1)
    # softmax over the W axis (axis=2 in NHWC) == torch softmax(dim=-1) on NCHW
    x2 = jax.nn.softmax(x2, axis=2)
    return x2 * x1


if __name__ == "__main__":
    B, Cin, Cout, H, W = 2, 4, 8, 16, 16

    key = jax.random.PRNGKey(0)
    kx, kw1, kb1, kw2, kb2 = jax.random.split(key, 5)

    # input in NCHW (as the PyTorch module expects), transposed to NHWC for the kernel
    x_nchw = jax.random.normal(kx, (B, Cin, H, W), jnp.float32)
    x_nhwc = jnp.transpose(x_nchw, (0, 2, 3, 1))

    # deterministic parameter init (nn.Conv2d(in, out, 3, padding=1) weights in HWIO)
    w1 = 0.1 * jax.random.normal(kw1, (3, 3, Cin, Cout), jnp.float32)
    b1 = 0.1 * jax.random.normal(kb1, (Cout,), jnp.float32)
    w2 = 0.1 * jax.random.normal(kw2, (3, 3, Cout, Cout), jnp.float32)
    b2 = 0.1 * jax.random.normal(kb2, (Cout,), jnp.float32)

    ref = attention2_ref(x_nhwc, w1, b1, w2, b2)

    # f32 MXU path (default): tight tolerance.
    out = jax.block_until_ready(attention2(x_nhwc, w1, b1, w2, b2))
    np.testing.assert_allclose(np.asarray(out), np.asarray(ref),
                               rtol=2e-4, atol=2e-5)

    # bf16 MXU path (production option for v6e/v7x): weights/input pre-cast in the
    # wrapper, f32 accumulation in the kernel; validated at a looser tolerance.
    out_bf16 = jax.block_until_ready(
        attention2(x_nhwc, w1, b1, w2, b2, mxu_dtype=jnp.bfloat16))
    np.testing.assert_allclose(np.asarray(out_bf16), np.asarray(ref),
                               rtol=5e-2, atol=5e-3)

    print("KERNEL_OK")
</pallas_src>

<mosaic_0001>
module attributes {stable_mosaic.version = 11 : i64} {
  func.func @kernel(%arg0: i32, %arg1: memref<1x18x72xf32, #tpu.memory_space<vmem>>, %arg2: memref<3x72x128xf32, #tpu.memory_space<vmem>>, %arg3: memref<1x128xf32, #tpu.memory_space<vmem>>, %arg4: memref<3x128x128xf32, #tpu.memory_space<vmem>>, %arg5: memref<1x128xf32, #tpu.memory_space<vmem>>, %arg6: memref<1x16x128xf32, #tpu.memory_space<vmem>>) attributes {dimension_semantics = [#tpu.dimension_semantics<parallel>], iteration_bounds = array<i64: 2>, scalar_prefetch = 0 : i64, scratch_operands = 0 : i64, tpu.core_type = #tpu.core_type<tc>, window_params = [{transform_indices = @transform_0, window_bounds = array<i64: 1, 18, 72>}, {pipeline_mode = #tpu.pipeline_mode<synchronous>, transform_indices = @transform_1, window_bounds = array<i64: 3, 72, 128>}, {pipeline_mode = #tpu.pipeline_mode<synchronous>, transform_indices = @transform_2, window_bounds = array<i64: 1, 128>}, {pipeline_mode = #tpu.pipeline_mode<synchronous>, transform_indices = @transform_3, window_bounds = array<i64: 3, 128, 128>}, {pipeline_mode = #tpu.pipeline_mode<synchronous>, transform_indices = @transform_4, window_bounds = array<i64: 1, 128>}, {transform_indices = @transform_5, window_bounds = array<i64: 1, 16, 128>}]} {
    %c0 = arith.constant 0 : index
    %c0_0 = arith.constant 0 : index
    %c0_1 = arith.constant 0 : index
    %0 = vector.load %arg1[%c0, %c0_0, %c0_1] : memref<1x18x72xf32, #tpu.memory_space<vmem>>, vector<1x18x72xf32>
    %cst = arith.constant 0.000000e+00 : f32
    %1 = vector.broadcast %cst : f32 to vector<16x128xf32>
    %2 = vector.extract_strided_slice %0 {offsets = [0, 0, 0], sizes = [1, 16, 72], strides = [1, 1, 1]} : vector<1x18x72xf32> to vector<1x16x72xf32>
    %3 = vector.shape_cast %2 : vector<1x16x72xf32> to vector<16x72xf32>
    %c0_2 = arith.constant 0 : index
    %c0_3 = arith.constant 0 : index
    %c0_4 = arith.constant 0 : index
    %4 = vector.load %arg2[%c0_2, %c0_3, %c0_4] : memref<3x72x128xf32, #tpu.memory_space<vmem>>, vector<1x72x128xf32>
    %5 = vector.shape_cast %4 : vector<1x72x128xf32> to vector<72x128xf32>
    %cst_5 = arith.constant dense<0.000000e+00> : vector<16x128xf32>
    %6 = tpu.matmul %3, %5, %cst_5 {dimension_numbers = #tpu.dot_dimension_numbers<[1], [0], [0], [1], [0, 0, 1, 1], [], []>} : vector<16x72xf32>, vector<72x128xf32>, vector<16x128xf32> -> vector<16x128xf32>
    %7 = arith.addf %1, %6 : vector<16x128xf32>
    %8 = vector.extract_strided_slice %0 {offsets = [0, 1, 0], sizes = [1, 16, 72], strides = [1, 1, 1]} : vector<1x18x72xf32> to vector<1x16x72xf32>
    %9 = vector.shape_cast %8 : vector<1x16x72xf32> to vector<16x72xf32>
    %c1 = arith.constant 1 : index
    %c0_6 = arith.constant 0 : index
    %c0_7 = arith.constant 0 : index
    %10 = vector.load %arg2[%c1, %c0_6, %c0_7] : memref<3x72x128xf32, #tpu.memory_space<vmem>>, vector<1x72x128xf32>
    %11 = vector.shape_cast %10 : vector<1x72x128xf32> to vector<72x128xf32>
    %cst_8 = arith.constant dense<0.000000e+00> : vector<16x128xf32>
    %12 = tpu.matmul %9, %11, %cst_8 {dimension_numbers = #tpu.dot_dimension_numbers<[1], [0], [0], [1], [0, 0, 1, 1], [], []>} : vector<16x72xf32>, vector<72x128xf32>, vector<16x128xf32> -> vector<16x128xf32>
    %13 = arith.addf %7, %12 : vector<16x128xf32>
    %14 = vector.extract_strided_slice %0 {offsets = [0, 2, 0], sizes = [1, 16, 72], strides = [1, 1, 1]} : vector<1x18x72xf32> to vector<1x16x72xf32>
    %15 = vector.shape_cast %14 : vector<1x16x72xf32> to vector<16x72xf32>
    %c2 = arith.constant 2 : index
    %c0_9 = arith.constant 0 : index
    %c0_10 = arith.constant 0 : index
    %16 = vector.load %arg2[%c2, %c0_9, %c0_10] : memref<3x72x128xf32, #tpu.memory_space<vmem>>, vector<1x72x128xf32>
    %17 = vector.shape_cast %16 : vector<1x72x128xf32> to vector<72x128xf32>
    %cst_11 = arith.constant dense<0.000000e+00> : vector<16x128xf32>
    %18 = tpu.matmul %15, %17, %cst_11 {dimension_numbers = #tpu.dot_dimension_numbers<[1], [0], [0], [1], [0, 0, 1, 1], [], []>} : vector<16x72xf32>, vector<72x128xf32>, vector<16x128xf32> -> vector<16x128xf32>
    %19 = arith.addf %13, %18 : vector<16x128xf32>
    %c0_12 = arith.constant 0 : index
    %c0_13 = arith.constant 0 : index
    %20 = vector.load %arg3[%c0_12, %c0_13] : memref<1x128xf32, #tpu.memory_space<vmem>>, vector<1x128xf32>
    %21 = vector.broadcast %20 : vector<1x128xf32> to vector<16x128xf32>
    %22 = arith.addf %19, %21 : vector<16x128xf32>
    %cst_14 = arith.constant 0.000000e+00 : f32
    %23 = vector.broadcast %cst_14 : f32 to vector<16x128xf32>
    %24 = arith.maximumf %22, %23 : vector<16x128xf32>
    %25 = vector.shape_cast %24 : vector<16x128xf32> to vector<1x16x128xf32>
    %cst_15 = arith.constant 0.000000e+00 : f32
    %26 = vector.broadcast %cst_15 : f32 to vector<1x1x128xf32>
    %27 = tpu.concatenate %26, %25, %26 in 1 : vector<1x1x128xf32>, vector<1x16x128xf32>, vector<1x1x128xf32> -> vector<1x18x128xf32>
    %cst_16 = arith.constant 0.000000e+00 : f32
    %28 = vector.broadcast %cst_16 : f32 to vector<16x128xf32>
    %29 = vector.extract_strided_slice %27 {offsets = [0, 0, 0], sizes = [1, 16, 128], strides = [1, 1, 1]} : vector<1x18x128xf32> to vector<1x16x128xf32>
    %30 = vector.shape_cast %29 : vector<1x16x128xf32> to vector<16x128xf32>
    %c0_17 = arith.constant 0 : index
    %c0_18 = arith.constant 0 : index
    %c0_19 = arith.constant 0 : index
    %31 = vector.load %arg4[%c0_17, %c0_18, %c0_19] : memref<3x128x128xf32, #tpu.memory_space<vmem>>, vector<1x128x128xf32>
    %32 = vector.shape_cast %31 : vector<1x128x128xf32> to vector<128x128xf32>
    %cst_20 = arith.constant dense<0.000000e+00> : vector<16x128xf32>
    %33 = tpu.matmul %30, %32, %cst_20 {dimension_numbers = #tpu.dot_dimension_numbers<[1], [0], [0], [1], [0, 0, 1, 1], [], []>} : vector<16x128xf32>, vector<128x128xf32>, vector<16x128xf32> -> vector<16x128xf32>
    %34 = arith.addf %28, %33 : vector<16x128xf32>
    %35 = vector.extract_strided_slice %27 {offsets = [0, 1, 0], sizes = [1, 16, 128], strides = [1, 1, 1]} : vector<1x18x128xf32> to vector<1x16x128xf32>
    %36 = vector.shape_cast %35 : vector<1x16x128xf32> to vector<16x128xf32>
    %c1_21 = arith.constant 1 : index
    %c0_22 = arith.constant 0 : index
    %c0_23 = arith.constant 0 : index
    %37 = vector.load %arg4[%c1_21, %c0_22, %c0_23] : memref<3x128x128xf32, #tpu.memory_space<vmem>>, vector<1x128x128xf32>
    %38 = vector.shape_cast %37 : vector<1x128x128xf32> to vector<128x128xf32>
    %cst_24 = arith.constant dense<0.000000e+00> : vector<16x128xf32>
    %39 = tpu.matmul %36, %38, %cst_24 {dimension_numbers = #tpu.dot_dimension_numbers<[1], [0], [0], [1], [0, 0, 1, 1], [], []>} : vector<16x128xf32>, vector<128x128xf32>, vector<16x128xf32> -> vector<16x128xf32>
    %40 = arith.addf %34, %39 : vector<16x128xf32>
    %41 = vector.extract_strided_slice %27 {offsets = [0, 2, 0], sizes = [1, 16, 128], strides = [1, 1, 1]} : vector<1x18x128xf32> to vector<1x16x128xf32>
    %42 = vector.shape_cast %41 : vector<1x16x128xf32> to vector<16x128xf32>
    %c2_25 = arith.constant 2 : index
    %c0_26 = arith.constant 0 : index
    %c0_27 = arith.constant 0 : index
    %43 = vector.load %arg4[%c2_25, %c0_26, %c0_27] : memref<3x128x128xf32, #tpu.memory_space<vmem>>, vector<1x128x128xf32>
    %44 = vector.shape_cast %43 : vector<1x128x128xf32> to vector<128x128xf32>
    %cst_28 = arith.constant dense<0.000000e+00> : vector<16x128xf32>
    %45 = tpu.matmul %42, %44, %cst_28 {dimension_numbers = #tpu.dot_dimension_numbers<[1], [0], [0], [1], [0, 0, 1, 1], [], []>} : vector<16x128xf32>, vector<128x128xf32>, vector<16x128xf32> -> vector<16x128xf32>
    %46 = arith.addf %40, %45 : vector<16x128xf32>
    %c0_29 = arith.constant 0 : index
    %c0_30 = arith.constant 0 : index
    %47 = vector.load %arg5[%c0_29, %c0_30] : memref<1x128xf32, #tpu.memory_space<vmem>>, vector<1x128xf32>
    %48 = vector.broadcast %47 : vector<1x128xf32> to vector<16x128xf32>
    %49 = arith.addf %46, %48 : vector<16x128xf32>
    %c8_i32 = arith.constant 8 : i32
    %50 = tpu.dynamic_rotate %49 by %c8_i32 dim 1 : vector<16x128xf32>, i32 -> vector<16x128xf32>
    %51 = arith.maximumf %49, %50 : vector<16x128xf32>
    %c16_i32 = arith.constant 16 : i32
    %52 = tpu.dynamic_rotate %51 by %c16_i32 dim 1 : vector<16x128xf32>, i32 -> vector<16x128xf32>
    %53 = arith.maximumf %51, %52 : vector<16x128xf32>
    %c32_i32 = arith.constant 32 : i32
    %54 = tpu.dynamic_rotate %53 by %c32_i32 dim 1 : vector<16x128xf32>, i32 -> vector<16x128xf32>
    %55 = arith.maximumf %53, %54 : vector<16x128xf32>
    %c64_i32 = arith.constant 64 : i32
    %56 = tpu.dynamic_rotate %55 by %c64_i32 dim 1 : vector<16x128xf32>, i32 -> vector<16x128xf32>
    %57 = arith.maximumf %55, %56 : vector<16x128xf32>
    %58 = arith.subf %49, %57 : vector<16x128xf32>
    %59 = math.exp %58 : vector<16x128xf32>
    %c8_i32_31 = arith.constant 8 : i32
    %60 = tpu.dynamic_rotate %59 by %c8_i32_31 dim 1 : vector<16x128xf32>, i32 -> vector<16x128xf32>
    %61 = arith.addf %59, %60 : vector<16x128xf32>
    %c16_i32_32 = arith.constant 16 : i32
    %62 = tpu.dynamic_rotate %61 by %c16_i32_32 dim 1 : vector<16x128xf32>, i32 -> vector<16x128xf32>
    %63 = arith.addf %61, %62 : vector<16x128xf32>
    %c32_i32_33 = arith.constant 32 : i32
    %64 = tpu.dynamic_rotate %63 by %c32_i32_33 dim 1 : vector<16x128xf32>, i32 -> vector<16x128xf32>
    %65 = arith.addf %63, %64 : vector<16x128xf32>
    %c64_i32_34 = arith.constant 64 : i32
    %66 = tpu.dynamic_rotate %65 by %c64_i32_34 dim 1 : vector<16x128xf32>, i32 -> vector<16x128xf32>
    %67 = arith.addf %65, %66 : vector<16x128xf32>
    %68 = tpu.reciprocal %67 : vector<16x128xf32> -> vector<16x128xf32>
    %69 = arith.mulf %59, %68 : vector<16x128xf32>
    %70 = arith.mulf %69, %24 : vector<16x128xf32>
    %71 = vector.shape_cast %70 : vector<16x128xf32> to vector<1x16x128xf32>
    %c0_35 = arith.constant 0 : index
    %c0_36 = arith.constant 0 : index
    %c0_37 = arith.constant 0 : index
    %72 = vector.load %arg6[%c0_35, %c0_36, %c0_37] : memref<1x16x128xf32, #tpu.memory_space<vmem>>, vector<1x16x128xf32>
    tpu.vector_store %arg6[%c0_35, %c0_36, %c0_37], %71 {strides = array<i32>} : memref<1x16x128xf32, #tpu.memory_space<vmem>>, vector<1x16x128xf32>,
    return
  }
  func.func @transform_0(%arg0: i32) -> (i32, i32, i32) {
    %c0_i32 = arith.constant 0 : i32
    %c0_i32_0 = arith.constant 0 : i32
    %c0_i32_1 = arith.constant 0 : i32
    return %arg0, %c0_i32, %c0_i32_0 : i32, i32, i32
  }
  func.func @transform_1(%arg0: i32) -> (i32, i32, i32) {
    %c0_i32 = arith.constant 0 : i32
    %c0_i32_0 = arith.constant 0 : i32
    %c0_i32_1 = arith.constant 0 : i32
    %c0_i32_2 = arith.constant 0 : i32
    return %c0_i32, %c0_i32_0, %c0_i32_1 : i32, i32, i32
  }
  func.func @transform_2(%arg0: i32) -> (i32, i32) {
    %c0_i32 = arith.constant 0 : i32
    %c0_i32_0 = arith.constant 0 : i32
    %c0_i32_1 = arith.constant 0 : i32
    return %c0_i32, %c0_i32_0 : i32, i32
  }
  func.func @transform_3(%arg0: i32) -> (i32, i32, i32) {
    %c0_i32 = arith.constant 0 : i32
    %c0_i32_0 = arith.constant 0 : i32
    %c0_i32_1 = arith.constant 0 : i32
    %c0_i32_2 = arith.constant 0 : i32
    return %c0_i32, %c0_i32_0, %c0_i32_1 : i32, i32, i32
  }
  func.func @transform_4(%arg0: i32) -> (i32, i32) {
    %c0_i32 = arith.constant 0 : i32
    %c0_i32_0 = arith.constant 0 : i32
    %c0_i32_1 = arith.constant 0 : i32
    return %c0_i32, %c0_i32_0 : i32, i32
  }
  func.func @transform_5(%arg0: i32) -> (i32, i32, i32) {
    %c0_i32 = arith.constant 0 : i32
    %c0_i32_0 = arith.constant 0 : i32
    %c0_i32_1 = arith.constant 0 : i32
    return %arg0, %c0_i32, %c0_i32_0 : i32, i32, i32
  }
}

module attributes {stable_mosaic.version = 11 : i64} {
  func.func @kernel(%arg0: i32, %arg1: memref<1x18x72xf32, #tpu.memory_space<vmem>>, %arg2: memref<3x72x128xf32, #tpu.memory_space<vmem>>, %arg3: memref<1x128xf32, #tpu.memory_space<vmem>>, %arg4: memref<3x128x128xf32, #tpu.memory_space<vmem>>, %arg5: memref<1x128xf32, #tpu.memory_space<vmem>>, %arg6: memref<1x16x128xf32, #tpu.memory_space<vmem>>) attributes {dimension_semantics = [#tpu.dimension_semantics<parallel>], iteration_bounds = array<i64: 2>, scalar_prefetch = 0 : i64, scratch_operands = 0 : i64, tpu.core_type = #tpu.core_type<tc>, window_params = [{transform_indices = @transform_0, window_bounds = array<i64: 1, 18, 72>}, {pipeline_mode = #tpu.pipeline_mode<synchronous>, transform_indices = @transform_1, window_bounds = array<i64: 3, 72, 128>}, {pipeline_mode = #tpu.pipeline_mode<synchronous>, transform_indices = @transform_2, window_bounds = array<i64: 1, 128>}, {pipeline_mode = #tpu.pipeline_mode<synchronous>, transform_indices = @transform_3, window_bounds = array<i64: 3, 128, 128>}, {pipeline_mode = #tpu.pipeline_mode<synchronous>, transform_indices = @transform_4, window_bounds = array<i64: 1, 128>}, {transform_indices = @transform_5, window_bounds = array<i64: 1, 16, 128>}]} {
    %c0 = arith.constant 0 : index
    %c0_0 = arith.constant 0 : index
    %c0_1 = arith.constant 0 : index
    %0 = vector.load %arg1[%c0, %c0_0, %c0_1] : memref<1x18x72xf32, #tpu.memory_space<vmem>>, vector<1x18x72xf32>
    %cst = arith.constant 0.000000e+00 : f32
    %1 = vector.broadcast %cst : f32 to vector<16x128xf32>
    %2 = vector.extract_strided_slice %0 {offsets = [0, 0, 0], sizes = [1, 16, 72], strides = [1, 1, 1]} : vector<1x18x72xf32> to vector<1x16x72xf32>
    %3 = vector.shape_cast %2 : vector<1x16x72xf32> to vector<16x72xf32>
    %c0_2 = arith.constant 0 : index
    %c0_3 = arith.constant 0 : index
    %c0_4 = arith.constant 0 : index
    %4 = vector.load %arg2[%c0_2, %c0_3, %c0_4] : memref<3x72x128xf32, #tpu.memory_space<vmem>>, vector<1x72x128xf32>
    %5 = vector.shape_cast %4 : vector<1x72x128xf32> to vector<72x128xf32>
    %cst_5 = arith.constant dense<0.000000e+00> : vector<16x128xf32>
    %6 = tpu.matmul %3, %5, %cst_5 {dimension_numbers = #tpu.dot_dimension_numbers<[1], [0], [0], [1], [0, 0, 1, 1], [], []>} : vector<16x72xf32>, vector<72x128xf32>, vector<16x128xf32> -> vector<16x128xf32>
    %7 = arith.addf %1, %6 : vector<16x128xf32>
    %8 = vector.extract_strided_slice %0 {offsets = [0, 1, 0], sizes = [1, 16, 72], strides = [1, 1, 1]} : vector<1x18x72xf32> to vector<1x16x72xf32>
    %9 = vector.shape_cast %8 : vector<1x16x72xf32> to vector<16x72xf32>
    %c1 = arith.constant 1 : index
    %c0_6 = arith.constant 0 : index
    %c0_7 = arith.constant 0 : index
    %10 = vector.load %arg2[%c1, %c0_6, %c0_7] : memref<3x72x128xf32, #tpu.memory_space<vmem>>, vector<1x72x128xf32>
    %11 = vector.shape_cast %10 : vector<1x72x128xf32> to vector<72x128xf32>
    %cst_8 = arith.constant dense<0.000000e+00> : vector<16x128xf32>
    %12 = tpu.matmul %9, %11, %cst_8 {dimension_numbers = #tpu.dot_dimension_numbers<[1], [0], [0], [1], [0, 0, 1, 1], [], []>} : vector<16x72xf32>, vector<72x128xf32>, vector<16x128xf32> -> vector<16x128xf32>
    %13 = arith.addf %7, %12 : vector<16x128xf32>
    %14 = vector.extract_strided_slice %0 {offsets = [0, 2, 0], sizes = [1, 16, 72], strides = [1, 1, 1]} : vector<1x18x72xf32> to vector<1x16x72xf32>
    %15 = vector.shape_cast %14 : vector<1x16x72xf32> to vector<16x72xf32>
    %c2 = arith.constant 2 : index
    %c0_9 = arith.constant 0 : index
    %c0_10 = arith.constant 0 : index
    %16 = vector.load %arg2[%c2, %c0_9, %c0_10] : memref<3x72x128xf32, #tpu.memory_space<vmem>>, vector<1x72x128xf32>
    %17 = vector.shape_cast %16 : vector<1x72x128xf32> to vector<72x128xf32>
    %cst_11 = arith.constant dense<0.000000e+00> : vector<16x128xf32>
    %18 = tpu.matmul %15, %17, %cst_11 {dimension_numbers = #tpu.dot_dimension_numbers<[1], [0], [0], [1], [0, 0, 1, 1], [], []>} : vector<16x72xf32>, vector<72x128xf32>, vector<16x128xf32> -> vector<16x128xf32>
    %19 = arith.addf %13, %18 : vector<16x128xf32>
    %c0_12 = arith.constant 0 : index
    %c0_13 = arith.constant 0 : index
    %20 = vector.load %arg3[%c0_12, %c0_13] : memref<1x128xf32, #tpu.memory_space<vmem>>, vector<1x128xf32>
    %21 = vector.broadcast %20 : vector<1x128xf32> to vector<16x128xf32>
    %22 = arith.addf %19, %21 : vector<16x128xf32>
    %cst_14 = arith.constant 0.000000e+00 : f32
    %23 = vector.broadcast %cst_14 : f32 to vector<16x128xf32>
    %24 = arith.maximumf %22, %23 : vector<16x128xf32>
    %25 = vector.shape_cast %24 : vector<16x128xf32> to vector<1x16x128xf32>
    %cst_15 = arith.constant 0.000000e+00 : f32
    %26 = vector.broadcast %cst_15 : f32 to vector<1x1x128xf32>
    %27 = tpu.concatenate %26, %25, %26 in 1 : vector<1x1x128xf32>, vector<1x16x128xf32>, vector<1x1x128xf32> -> vector<1x18x128xf32>
    %cst_16 = arith.constant 0.000000e+00 : f32
    %28 = vector.broadcast %cst_16 : f32 to vector<16x128xf32>
    %29 = vector.extract_strided_slice %27 {offsets = [0, 0, 0], sizes = [1, 16, 128], strides = [1, 1, 1]} : vector<1x18x128xf32> to vector<1x16x128xf32>
    %30 = vector.shape_cast %29 : vector<1x16x128xf32> to vector<16x128xf32>
    %c0_17 = arith.constant 0 : index
    %c0_18 = arith.constant 0 : index
    %c0_19 = arith.constant 0 : index
    %31 = vector.load %arg4[%c0_17, %c0_18, %c0_19] : memref<3x128x128xf32, #tpu.memory_space<vmem>>, vector<1x128x128xf32>
    %32 = vector.shape_cast %31 : vector<1x128x128xf32> to vector<128x128xf32>
    %cst_20 = arith.constant dense<0.000000e+00> : vector<16x128xf32>
    %33 = tpu.matmul %30, %32, %cst_20 {dimension_numbers = #tpu.dot_dimension_numbers<[1], [0], [0], [1], [0, 0, 1, 1], [], []>} : vector<16x128xf32>, vector<128x128xf32>, vector<16x128xf32> -> vector<16x128xf32>
    %34 = arith.addf %28, %33 : vector<16x128xf32>
    %35 = vector.extract_strided_slice %27 {offsets = [0, 1, 0], sizes = [1, 16, 128], strides = [1, 1, 1]} : vector<1x18x128xf32> to vector<1x16x128xf32>
    %36 = vector.shape_cast %35 : vector<1x16x128xf32> to vector<16x128xf32>
    %c1_21 = arith.constant 1 : index
    %c0_22 = arith.constant 0 : index
    %c0_23 = arith.constant 0 : index
    %37 = vector.load %arg4[%c1_21, %c0_22, %c0_23] : memref<3x128x128xf32, #tpu.memory_space<vmem>>, vector<1x128x128xf32>
    %38 = vector.shape_cast %37 : vector<1x128x128xf32> to vector<128x128xf32>
    %cst_24 = arith.constant dense<0.000000e+00> : vector<16x128xf32>
    %39 = tpu.matmul %36, %38, %cst_24 {dimension_numbers = #tpu.dot_dimension_numbers<[1], [0], [0], [1], [0, 0, 1, 1], [], []>} : vector<16x128xf32>, vector<128x128xf32>, vector<16x128xf32> -> vector<16x128xf32>
    %40 = arith.addf %34, %39 : vector<16x128xf32>
    %41 = vector.extract_strided_slice %27 {offsets = [0, 2, 0], sizes = [1, 16, 128], strides = [1, 1, 1]} : vector<1x18x128xf32> to vector<1x16x128xf32>
    %42 = vector.shape_cast %41 : vector<1x16x128xf32> to vector<16x128xf32>
    %c2_25 = arith.constant 2 : index
    %c0_26 = arith.constant 0 : index
    %c0_27 = arith.constant 0 : index
    %43 = vector.load %arg4[%c2_25, %c0_26, %c0_27] : memref<3x128x128xf32, #tpu.memory_space<vmem>>, vector<1x128x128xf32>
    %44 = vector.shape_cast %43 : vector<1x128x128xf32> to vector<128x128xf32>
    %cst_28 = arith.constant dense<0.000000e+00> : vector<16x128xf32>
    %45 = tpu.matmul %42, %44, %cst_28 {dimension_numbers = #tpu.dot_dimension_numbers<[1], [0], [0], [1], [0, 0, 1, 1], [], []>} : vector<16x128xf32>, vector<128x128xf32>, vector<16x128xf32> -> vector<16x128xf32>
    %46 = arith.addf %40, %45 : vector<16x128xf32>
    %c0_29 = arith.constant 0 : index
    %c0_30 = arith.constant 0 : index
    %47 = vector.load %arg5[%c0_29, %c0_30] : memref<1x128xf32, #tpu.memory_space<vmem>>, vector<1x128xf32>
    %48 = vector.broadcast %47 : vector<1x128xf32> to vector<16x128xf32>
    %49 = arith.addf %46, %48 : vector<16x128xf32>
    %c8_i32 = arith.constant 8 : i32
    %50 = tpu.dynamic_rotate %49 by %c8_i32 dim 1 : vector<16x128xf32>, i32 -> vector<16x128xf32>
    %51 = arith.maximumf %49, %50 : vector<16x128xf32>
    %c16_i32 = arith.constant 16 : i32
    %52 = tpu.dynamic_rotate %51 by %c16_i32 dim 1 : vector<16x128xf32>, i32 -> vector<16x128xf32>
    %53 = arith.maximumf %51, %52 : vector<16x128xf32>
    %c32_i32 = arith.constant 32 : i32
    %54 = tpu.dynamic_rotate %53 by %c32_i32 dim 1 : vector<16x128xf32>, i32 -> vector<16x128xf32>
    %55 = arith.maximumf %53, %54 : vector<16x128xf32>
    %c64_i32 = arith.constant 64 : i32
    %56 = tpu.dynamic_rotate %55 by %c64_i32 dim 1 : vector<16x128xf32>, i32 -> vector<16x128xf32>
    %57 = arith.maximumf %55, %56 : vector<16x128xf32>
    %58 = arith.subf %49, %57 : vector<16x128xf32>
    %59 = math.exp %58 : vector<16x128xf32>
    %c8_i32_31 = arith.constant 8 : i32
    %60 = tpu.dynamic_rotate %59 by %c8_i32_31 dim 1 : vector<16x128xf32>, i32 -> vector<16x128xf32>
    %61 = arith.addf %59, %60 : vector<16x128xf32>
    %c16_i32_32 = arith.constant 16 : i32
    %62 = tpu.dynamic_rotate %61 by %c16_i32_32 dim 1 : vector<16x128xf32>, i32 -> vector<16x128xf32>
    %63 = arith.addf %61, %62 : vector<16x128xf32>
    %c32_i32_33 = arith.constant 32 : i32
    %64 = tpu.dynamic_rotate %63 by %c32_i32_33 dim 1 : vector<16x128xf32>, i32 -> vector<16x128xf32>
    %65 = arith.addf %63, %64 : vector<16x128xf32>
    %c64_i32_34 = arith.constant 64 : i32
    %66 = tpu.dynamic_rotate %65 by %c64_i32_34 dim 1 : vector<16x128xf32>, i32 -> vector<16x128xf32>
    %67 = arith.addf %65, %66 : vector<16x128xf32>
    %68 = tpu.reciprocal %67 : vector<16x128xf32> -> vector<16x128xf32>
    %69 = arith.mulf %59, %68 : vector<16x128xf32>
    %70 = arith.mulf %69, %24 : vector<16x128xf32>
    %71 = vector.shape_cast %70 : vector<16x128xf32> to vector<1x16x128xf32>
    %c0_35 = arith.constant 0 : index
    %c0_36 = arith.constant 0 : index
    %c0_37 = arith.constant 0 : index
    %72 = vector.load %arg6[%c0_35, %c0_36, %c0_37] : memref<1x16x128xf32, #tpu.memory_space<vmem>>, vector<1x16x128xf32>
    tpu.vector_store %arg6[%c0_35, %c0_36, %c0_37], %71 {strides = array<i32>} : memref<1x16x128xf32, #tpu.memory_space<vmem>>, vector<1x16x128xf32>,
    return
  }
  func.func @transform_0(%arg0: i32) -> (i32, i32, i32) {
    %c0_i32 = arith.constant 0 : i32
    %c0_i32_0 = arith.constant 0 : i32
    %c0_i32_1 = arith.constant 0 : i32
    return %arg0, %c0_i32, %c0_i32_0 : i32, i32, i32
  }
  func.func @transform_1(%arg0: i32) -> (i32, i32, i32) {
    %c0_i32 = arith.constant 0 : i32
    %c0_i32_0 = arith.constant 0 : i32
    %c0_i32_1 = arith.constant 0 : i32
    %c0_i32_2 = arith.constant 0 : i32
    return %c0_i32, %c0_i32_0, %c0_i32_1 : i32, i32, i32
  }
  func.func @transform_2(%arg0: i32) -> (i32, i32) {
    %c0_i32 = arith.constant 0 : i32
    %c0_i32_0 = arith.constant 0 : i32
    %c0_i32_1 = arith.constant 0 : i32
    return %c0_i32, %c0_i32_0 : i32, i32
  }
  func.func @transform_3(%arg0: i32) -> (i32, i32, i32) {
    %c0_i32 = arith.constant 0 : i32
    %c0_i32_0 = arith.constant 0 : i32
    %c0_i32_1 = arith.constant 0 : i32
    %c0_i32_2 = arith.constant 0 : i32
    return %c0_i32, %c0_i32_0, %c0_i32_1 : i32, i32, i32
  }
  func.func @transform_4(%arg0: i32) -> (i32, i32) {
    %c0_i32 = arith.constant 0 : i32
    %c0_i32_0 = arith.constant 0 : i32
    %c0_i32_1 = arith.constant 0 : i32
    return %c0_i32, %c0_i32_0 : i32, i32
  }
  func.func @transform_5(%arg0: i32) -> (i32, i32, i32) {
    %c0_i32 = arith.constant 0 : i32
    %c0_i32_0 = arith.constant 0 : i32
    %c0_i32_1 = arith.constant 0 : i32
    return %arg0, %c0_i32, %c0_i32_0 : i32, i32, i32
  }
}

</mosaic_0001>

<bundles_post_ra>
// kernel: tpu_custom_call.1
= control target key start
LH: loop header
LB: loop body
LE: loop exit
PB: predicated region body
PF: predicated region fallthrough
CT: control target
= control target key end

     0   :  { %10 = vsyncpa [#allocation3], 0  ;;  %s1755_s0 = inlined_call_operand.vmem [shape: f32[2,18,72], index: 0, kind: input, shape index: {}]   ;;  %s1756_s1 = inlined_call_operand.hbm [shape: f32[3,72,128], index: 1, kind: input, shape index: {}]   ;;  %s1757_s2 = inlined_call_operand.vmem [shape: f32[1,128], index: 2, kind: input, shape index: {}]   ;;  %s1758_s3 = inlined_call_operand.hbm [shape: f32[3,128,128], index: 3, kind: input, shape index: {}]   ;;  %s1759_s4 = inlined_call_operand.vmem [shape: f32[1,128], index: 4, kind: input, shape index: {}]   ;;  %s1760_s5 = inlined_call_operand.hbm [shape: f32[2,16,128], index: 5, kind: output, shape index: {}]  }
   0x1   :  { %11 = vsyncpa [#allocation6], 0 }
   0x2   :  { %12 = vsyncpa [#allocation4], 0 }
   0x3   :  { %14 = vsyncpa [#allocation4 + $0x1], 0  ;;  %s1543_s18 = smov 0   ;;  %s1545_s19 = smov 0  }
   0x4   :  { %s1547_s20 = smov 0   ;;  %s1549_s21 = smov 0  }
   0x5 LB: > { %s1564_s22 = sadd.s32 4294967295, %s1501_s21   ;;  %s1024_s23 = sadd.s32 4294967294, %s1501_s21   ;;  %s1501_s21 = sphi %s1549_s21, %s1774_s21   ;;  %s1497_s20 = sphi %s1547_s20, %s1773_s20   ;;  %s1493_s19 = sphi %s1545_s19, %s1772_s19   ;;  %s1489_s18 = sphi %s1543_s18, %s1771_s18  }
   0x6   : > { %s1568_s24 = sadd.s32 1, %s1501_s21   ;;  %s137_s25 = sadd.s32 1, %s1497_s20 }
   0x7   : > { %s134_s26 = ssub.s32 %s1501_s21, %s1568_s24  ;;  %p147_p0 = scmp.ne.s32.totalorder %s1497_s20, %s1493_s19 }
   0x8   : > { %p135_p1 = scmp.eq.s32.totalorder %s134_s26, 0  ;;  %p148_p2 = scmp.eq.s32.totalorder %s1564_s22, 1 }
   0x9   : > { %p153_p3 = scmp.ne.s32.totalorder %s1493_s19, %s1489_s18  ;;  %p154_p4 = scmp.eq.s32.totalorder %s1024_s23, 1 }
   0xa   : > { %s1579_s27 = scalar_select %p135_p1, %s1497_s20, %s137_s25  }
   0xb   : > { %p1581_p5 = por %p148_p2, %p147_p0  ;;  %p1585_p6 = por %p154_p4, %p153_p3 }
   0xc   : > { %p1025_p7 = scmp.ge.s32.totalorder %s1501_s21, 1  ;;  %p161_p8 = scmp.lt.s32.totalorder %s1501_s21, 3 }
   0xd   : > { %s1763_s29 = scalar_select %p1585_p6, 1, 0 }
   0xe   : > { %p1761_p9 = scmp.eq.s32.totalorder %s1564_s22, 0  ;;  %p1592_p10 = pnand %p1025_p7, %p161_p8 }
   0xf   : > { %s1503_s6 = smov [#allocation2]   ;;  %s1504_s9 = smov [#allocation5]  }
  0x10   : > { %s173_s7 = sshll.u32 %s1503_s6, 4  ;;  %p1316_p11 = pneg %p1592_p10  ;;  %s174_s7 = int_to_ptr.vmem [resolvable:$true] %s173_s7 }
  0x11   : > { %s189_s10 = sshll.u32 %s1504_s9, 4  ;;  %s1392_s11 = scalar_lea.vmem %s174_s7, 3456  ;;  %s190_s10 = int_to_ptr.vmem [resolvable:$true] %s189_s10 }
  0x12   : > { %p1600_p12 = pnand %p1761_p9, %p1316_p11  ;;  %p1393_p0 = scmp.ne.s32.totalorder %s174_s7, %s1392_s11 }
  0x13   : > { %p1400_p3 = scmp.lt.s32.totalorder %s174_s7, %s174_s7  ;;  %p1401_p4 = scmp.lt.s32.totalorder %s1392_s11, %s1392_s11 }
  0x14   : > { %p1383_p13 = pneg %p1600_p12 }
  0x15   : > { %p1402_p7 = por %p1401_p4, %p1400_p3 }
  0x16   : > { %p1395_p1 = pnand %p1393_p0, %p1383_p13 }
  0x18   : > { %p1396_p2 = pneg %p1395_p1 }
  0x1a   : > { %p1403_p8 = pnand %p1402_p7, %p1396_p2 }
  0x1c   : > { %1406 = shalt.err (!%p1403_p8)
}
  0x1d   : > { %s1505_s12 = smov 128   ;;  %s1506_s13 = smov 8  }
  0x1e   : > { %1319 = dma.hbm_to_vmem [thread:$0]  (!%p1600_p12), %s1756_s1, 3456, %s174_s7, [#allocation3], %s1505_s12, %s1505_s12, %s1506_s13  }
  0x1f   : > { %s1418_s16 = scalar_lea.vmem %s190_s10, 6144  ;;  %p1426_p9 = scmp.lt.s32.totalorder %s190_s10, %s190_s10 }
  0x20   : > { %p1419_p11 = scmp.ne.s32.totalorder %s190_s10, %s1418_s16  ;;  %p1427_p6 = scmp.lt.s32.totalorder %s1418_s16, %s1418_s16 }
  0x22   : > { %p1421_p0 = pnand %p1419_p11, %p1383_p13  ;;  %p1428_p3 = por %p1427_p6, %p1426_p9 }
  0x24   : > { %p1422_p1 = pneg %p1421_p0 }
  0x26   : > { %p1429_p2 = pnand %p1428_p3, %p1422_p1 }
  0x28   : > { %1432 = shalt.err (!%p1429_p2)
}
  0x29   : > { %1322 = dma.hbm_to_vmem [thread:$0]  (!%p1600_p12), %s1758_s3, 6144, %s190_s10, [#allocation6], %s1505_s12, %s1505_s12, %s1506_s13  }
  0x2a   : > { %216 = sbr.rel (%p1592_p10) target bundleno = 1519 (0x5ef), region = 40  ;;  %p1766_p4 = scmp.eq.s32.totalorder (!%p1592_p10), %s1564_s22, 0 }
  0x2f   : > { %1476 = dma.done.wait (%p1766_p4), [#allocation3], 3456   ;;  %p1767_p13 = pmov %p1766_p4 }
  0x30   : > { %p1768_p7 = pmov %p1766_p4 }
  0x31   : > { %1478 = vsyncadd (%p1767_p13), [#allocation3], 4294963840 }
  0x32   : > { %1480 = dma.done.wait (%p1768_p7), [#allocation6], 6144   ;;  %p1769_p6 = pmov %p1766_p4 }
  0x33   : > { %p248_p9 = scmp.lt.s32.totalorder %s1564_s22, 1  ;;  %v274_v0 = vld [vmem:[#allocation2 + $0x88] sm:$0xff]  ;;  %v264_v1 = vld [vmem:[#allocation2 + $0x40] sm:$0xff]  ;;  %v263_v3 = vld [vmem:[#allocation2 + $0x38] sm:$0xff]  ;;  %vm278_vm0 = vcmask 1046528   ;;  %vm284_vm1 = vcmask 588800  }
  0x34   : > { %1482 = vsyncadd (%p1769_p6), [#allocation6], 4294961152  ;;  %v273_v2 = vld [vmem:[#allocation2 + $0x80] sm:$0xff]  ;;  %1137 = vmatprep.subr.mxu0 %v274_v0  ;;  %1158 = vmatprep.subr.mxu1 %v264_v1  ;;  %v272_v4 = vld [vmem:[#allocation2 + $0x78] sm:$0xff]  ;;  %vm453_vm2 = vcmask 1045504   ;;  %vm553_vm3 = vcmask 1040384  }
  0x35   : > { %s249_s25 = scalar_select %p248_p9, %s1564_s22, 1  ;;  %1138 = vmatpush3.msra.mxu0 %v274_v0  ;;  %1159 = vmatpush3.msra.mxu1 %v264_v1  ;;  %v262_v5 = vld [vmem:[#allocation2 + $0x30] sm:$0xff]  ;;  %v261_v7 = vld [vmem:[#allocation2 + $0x28] sm:$0xff]  ;;  %v260_v9 = vld [vmem:[#allocation2 + $0x20] sm:$0xff] }
  0x36   : > { %1139 = vmatprep.subr.mxu0 %v273_v2  ;;  %1160 = vmatprep.subr.mxu1 %v263_v3  ;;  %v271_v6 = vld [vmem:[#allocation2 + $0x70] sm:$0xff]  ;;  %v270_v8 = vld [vmem:[#allocation2 + $0x68] sm:$0xff]  ;;  %v269_v10 = vld [vmem:[#allocation2 + $0x60] sm:$0xff]  ;;  %s1507_s12 = smov 8   ;;  %s1508_s13 = smov 16  }
  0x37   : > { %s1305_s26 = smul.u32 24, %s249_s25  ;;  %1140 = vmatpush3.msra.mxu0 %v273_v2  ;;  %1161 = vmatpush3.msra.mxu1 %v263_v3  ;;  %v259_v11 = vld [vmem:[#allocation2 + $0x18] sm:$0xff]  ;;  %v258_v15 = vld [vmem:[#allocation2 + $0x10] sm:$0xff]  ;;  %v257_v20 = vld [vmem:[#allocation2 + $0x8] sm:$0xff]  ;;  %s1509_s14 = smov 32  }
  0x38   : > { %1141 = vmatprep.subr.mxu0 %v272_v4  ;;  %1162 = vmatprep.subr.mxu1 %v262_v5  ;;  %v268_v14 = vld [vmem:[#allocation2 + $0x58] sm:$0xff]  ;;  %v267_v19 = vld [vmem:[#allocation2 + $0x50] sm:$0xff]  ;;  %v266_v22 = vld [vmem:[#allocation2 + $0x48] sm:$0xff]  ;;  %s1510_s15 = smov 64   ;;  %s245_s16 = sand.u32 1, %s1493_s19  }
  0x39   : > { %s252_s7 = scalar_lea.vmem %s1755_s0, %s1305_s26  ;;  %1142 = vmatpush3.msra.mxu0 %v272_v4  ;;  %1163 = vmatpush3.msra.mxu1 %v262_v5  ;;  %v256_v23 = vld [vmem:[#allocation2] sm:$0xff]  ;;  %v452_v28 = vld [vmem:[#allocation2 + $0xd0] sm:$0xff]  ;;  %v451_v30 = vld [vmem:[#allocation2 + $0xc8] sm:$0xff]  ;;  %s1032_s17 = sshll.u32 %s245_s16, 4 }
  0x3a   : > { %1143 = vmatprep.subr.mxu0 %v271_v6  ;;  %1164 = vmatprep.subr.mxu1 %v261_v7  ;;  %v253_v12 = vld [vmem:[%s252_s7] sm:$0xff]  ;;  %v1637_v13 = vld [vmem:[%s252_s7 + $0x8] sm:$0xff]  ;;  %v1639_v16 = vld [vmem:[%s252_s7 + $0x10] sm:$0x3]  ;;  %s1049_s23 = sshll.u32 %s1564_s22, 8  ;;  %s247_s25 = scalar_lea.vmem [#allocation7], %s1032_s17 }
  0x3b   : > { %1144 = vmatpush3.msra.mxu0 %v271_v6  ;;  %1165 = vmatpush3.msra.mxu1 %v261_v7  ;;  %v279_v17 = vrot.slane %v253_v12, 1  ;;  %v280_v18 = vrot.slane %v1637_v13, 1  ;;  %v282_v21 = vrot.slane %v1639_v16, 1  ;;  %v454_v24 = vrot.slane %v253_v12, 2  ;;  %v450_v31 = vld [vmem:[#allocation2 + $0xc0] sm:$0xff]  ;;  %v449_v32 = vld [vmem:[#allocation2 + $0xb8] sm:$0xff]  ;;  %vm1041_vm4 = vmneg %vm553_vm3  ;;  %s1708_s7 = scalar_lea.hbm %s1760_s5, %s1049_s23 }
  0x3c   : > { %1145 = vmatprep.subr.mxu0 %v270_v8  ;;  %1166 = vmatprep.subr.mxu1 %v260_v9  ;;  %v455_v25 = vrot.slane %v1637_v13, 2  ;;  %v448_v33 = vld [vmem:[#allocation2 + $0xb0] sm:$0xff]  ;;  %v447_v34 = vld [vmem:[#allocation2 + $0xa8] sm:$0xff]  ;;  %v446_v35 = vld [vmem:[#allocation2 + $0xa0] sm:$0xff]  ;;  %v457_v36 = vrot.slane %v1639_v16, 2  ;;  %s940_s26 = sshll.u32 %s247_s25, 4  ;;  %s1712_s26 = int_to_ptr.vmem [resolvable:$true] %s940_s26 }
  0x3d   : > { %1146 = vmatpush3.msra.mxu0 %v270_v8  ;;  %1167 = vmatpush3.msra.mxu1 %v260_v9  ;;  %v281_v26 = vsel %vm278_vm0, %v279_v17, %v280_v18  ;;  %v283_v27 = vsel %vm278_vm0, %v280_v18, %v282_v21  ;;  %v445_v37 = vld [vmem:[#allocation2 + $0x98] sm:$0xff]  ;;  %v444_v38 = vld [vmem:[#allocation2 + $0x90] sm:$0xff]  ;;  %v576_v41 = vld [vmem:[#allocation5 + $0x70] sm:$0xff]  ;;  %s1714_s22 = scalar_lea.sflag [#allocation4], %s245_s16  ;;  %s1433_s8 = scalar_lea.vmem %s1712_s26, 256 }
  0x3e   : > { %1147 = vmatprep.subr.mxu0 %v269_v10  ;;  %1168 = vmatprep.subr.mxu1 %v259_v11  ;;  %v456_v29 = vsel %vm453_vm2, %v454_v24, %v455_v25  ;;  %v458_v39 = vsel %vm453_vm2, %v455_v25, %v457_v36  ;;  %v577_v40 = vld [vmem:[#allocation5 + $0x78] sm:$0xff]  ;;  %v575_v43 = vld [vmem:[#allocation5 + $0x68] sm:$0xff]  ;;  %v593_v44 = vld [vmem:[#allocation5 + $0xf0] sm:$0xff]  ;;  %p1434_p10 = scmp.ne.s32.totalorder %s1712_s26, %s1433_s8  ;;  %s1511_s9 = smov [#allocation7]  }
  0x3f   : > { %1148 = vmatpush3.msra.mxu0 %v269_v10  ;;  %1169 = vmatpush3.msra.mxu1 %v259_v11  ;;  %v594_v42 = vld [vmem:[#allocation5 + $0xf8] sm:$0xff]  ;;  %v574_v45 = vld [vmem:[#allocation5 + $0x60] sm:$0xff]  ;;  %v592_v46 = vld [vmem:[#allocation5 + $0xe8] sm:$0xff]  ;;  %s1437_s10 = sshll.u32 %s1511_s9, 4  ;;  %s1438_s10 = int_to_ptr.vmem [resolvable:$false] %s1437_s10 }
  0x40   : > { %1149 = vmatprep.subr.mxu0 %v268_v14  ;;  %1170 = vmatprep.subr.mxu1 %v258_v15  ;;  %v573_v47 = vld [vmem:[#allocation5 + $0x58] sm:$0xff]  ;;  %v591_v48 = vld [vmem:[#allocation5 + $0xe0] sm:$0xff]  ;;  %v572_v49 = vld [vmem:[#allocation5 + $0x50] sm:$0xff]  ;;  %p1435_p12 = pnand %p1434_p10, %p1581_p5  ;;  %s1439_s11 = scalar_lea.vmem %s1438_s10, 512 }
  0x41   : > { %1150 = vmatpush3.msra.mxu0 %v268_v14  ;;  %1171 = vmatpush3.msra.mxu1 %v258_v15  ;;  %v590_v50 = vld [vmem:[#allocation5 + $0xd8] sm:$0xff]  ;;  %v571_v51 = vld [vmem:[#allocation5 + $0x48] sm:$0xff]  ;;  %v589_v52 = vld [vmem:[#allocation5 + $0xd0] sm:$0xff]  ;;  %p1440_p11 = scmp.lt.s32.totalorder %s1712_s26, %s1438_s10  ;;  %p1441_p0 = scmp.lt.s32.totalorder %s1439_s11, %s1433_s8 }
  0x42   : > { %1151 = vmatprep.subr.mxu0 %v267_v19  ;;  %1172 = vmatprep.subr.mxu1 %v257_v20  ;;  %v570_v53 = vld [vmem:[#allocation5 + $0x40] sm:$0xff]  ;;  %v588_v54 = vld [vmem:[#allocation5 + $0xc8] sm:$0xff]  ;;  %v569_v55 = vld [vmem:[#allocation5 + $0x38] sm:$0xff]  ;;  %p1436_p8 = pneg %p1435_p12 }
  0x43   : > { %1152 = vmatpush3.msra.mxu0 %v267_v19  ;;  %1173 = vmatpush3.msra.mxu1 %v257_v20  ;;  %v587_v56 = vld [vmem:[#allocation5 + $0xc0] sm:$0xff]  ;;  %v568_v57 = vld [vmem:[#allocation5 + $0x30] sm:$0xff]  ;;  %v586_v58 = vld [vmem:[#allocation5 + $0xb8] sm:$0xff]  ;;  %p1442_p1 = por %p1441_p0, %p1440_p11 }
  0x44   : > { %1153 = vmatprep.subr.mxu0 %v266_v22  ;;  %1174 = vmatprep.subr.mxu1 %v256_v23  ;;  %v567_v59 = vld [vmem:[#allocation5 + $0x28] sm:$0xff]  ;;  %v585_v60 = vld [vmem:[#allocation5 + $0xb0] sm:$0xff]  ;;  %v566_v61 = vld [vmem:[#allocation5 + $0x20] sm:$0xff] }
  0x45   : > { %1154 = vmatpush3.msra.mxu0 %v266_v22  ;;  %1155 = vmatprep.mubr.msk.f32.mxu0 %vm284_vm1, %v281_v26  ;;  %v584_v62 = vld [vmem:[#allocation5 + $0xa8] sm:$0xff]  ;;  %v565_v63 = vld [vmem:[#allocation5 + $0x18] sm:$0xff]  ;;  %v583_v0 = vld [vmem:[#allocation5 + $0xa0] sm:$0xff]  ;;  %p1443_p3 = pnand %p1442_p1, %p1436_p8 }
  0x46   : > { %1175 = vmatpush3.msra.mxu1 %v256_v23  ;;  %1176 = vmatprep.mubr.msk.f32.mxu1 %vm284_vm1, %v253_v12  ;;  %v564_v1 = vld [vmem:[#allocation5 + $0x10] sm:$0xff]  ;;  %v582_v2 = vld [vmem:[#allocation5 + $0x98] sm:$0xff]  ;;  %v563_v3 = vld [vmem:[#allocation5 + $0x8] sm:$0xff] }
  0x47   : > { %1156 = vmatmul.mubr.msk.f32.vlgmr.msra.gmra.mxu0 %vm284_vm1, %v283_v27  ;;  %1177 = vmatmul.mubr.msk.f32.vlgmr.msra.gmra.mxu1 %vm284_vm1, %v1637_v13  ;;  %v581_v4 = vld [vmem:[#allocation5 + $0x90] sm:$0xff]  ;;  %v562_v5 = vld [vmem:[#allocation5] sm:$0xff]  ;;  %v580_v6 = vld [vmem:[#allocation5 + $0x88] sm:$0xff] }
  0x48   : > { %1179 = vmatprep.subr.mxu0 %v452_v28  ;;  %1197 = vmatprep.mubr.msk.f32.mxu0 %vm284_vm1, %v456_v29  ;;  %v579_v7 = vld [vmem:[#allocation5 + $0x80] sm:$0xff]  ;;  %v770_v8 = vld [vmem:[#allocation5 + $0x178] sm:$0xff]  ;;  %v1040_v15 = vld [vmem:[%s1757_s2] ss:$0 sm:$0xff] }
  0x49   : > { %1180 = vmatpush3.msra.mxu0 %v452_v28  ;;  %1200 = vmatprep.subr.mxu1 %v594_v42  ;;  %v769_v36 = vld [vmem:[#allocation5 + $0x170] sm:$0xff] }
  0x4a   : > { %1181 = vmatprep.subr.mxu0 %v451_v30  ;;  %1201 = vmatpush3.msra.mxu1 %v594_v42  ;;  %v764_v42 = vld [vmem:[#allocation5 + $0x148] sm:$0xff] }
  0x4b   : > { %1182 = vmatpush3.msra.mxu0 %v451_v30  ;;  %1202 = vmatprep.subr.mxu1 %v593_v44 }
  0x4c   : > { %1183 = vmatprep.subr.mxu0 %v450_v31  ;;  %1203 = vmatpush3.msra.mxu1 %v593_v44  ;;  %v762_v44 = vld [vmem:[#allocation5 + $0x138] sm:$0xff] }
  0x4d   : > { %1184 = vmatpush3.msra.mxu0 %v450_v31  ;;  %1204 = vmatprep.subr.mxu1 %v592_v46 }
  0x4e   : > { %1185 = vmatprep.subr.mxu0 %v449_v32  ;;  %1205 = vmatpush3.msra.mxu1 %v592_v46  ;;  %v760_v46 = vld [vmem:[#allocation5 + $0x128] sm:$0xff] }
  0x4f   : > { %1186 = vmatpush3.msra.mxu0 %v449_v32  ;;  %1206 = vmatprep.subr.mxu1 %v591_v48 }
  0x50   : > { %1187 = vmatprep.subr.mxu0 %v448_v33  ;;  %1207 = vmatpush3.msra.mxu1 %v591_v48  ;;  %v758_v48 = vld [vmem:[#allocation5 + $0x118] sm:$0xff] }
  0x51   : > { %1188 = vmatpush3.msra.mxu0 %v448_v33  ;;  %1208 = vmatprep.subr.mxu1 %v590_v50 }
  0x52   : > { %1189 = vmatprep.subr.mxu0 %v447_v34  ;;  %1209 = vmatpush3.msra.mxu1 %v590_v50  ;;  %v756_v50 = vld [vmem:[#allocation5 + $0x108] sm:$0xff] }
  0x53   : > { %1190 = vmatpush3.msra.mxu0 %v447_v34  ;;  %1210 = vmatprep.subr.mxu1 %v589_v52 }
  0x54   : > { %1191 = vmatprep.subr.mxu0 %v446_v35  ;;  %1211 = vmatpush3.msra.mxu1 %v589_v52 }
  0x55   : > { %1192 = vmatpush3.msra.mxu0 %v446_v35  ;;  %1212 = vmatprep.subr.mxu1 %v588_v54 }
  0x56   : > { %1193 = vmatprep.subr.mxu0 %v445_v37  ;;  %1213 = vmatpush3.msra.mxu1 %v588_v54 }
  0x57   : > { %1194 = vmatpush3.msra.mxu0 %v445_v37  ;;  %1214 = vmatprep.subr.mxu1 %v587_v56 }
  0x58   : > { %1195 = vmatprep.subr.mxu0 %v444_v38  ;;  %1215 = vmatpush3.msra.mxu1 %v587_v56 }
  0x59   : > { %1196 = vmatpush3.msra.mxu0 %v444_v38  ;;  %1216 = vmatprep.subr.mxu1 %v586_v58  ;;  %v768_v38 = vld [vmem:[#allocation5 + $0x168] sm:$0xff] }
  0x5a   : > { %1198 = vmatmul.mubr.msk.f32.vlgmr.msra.gmra.mxu0 %vm284_vm1, %v458_v39  ;;  %1235 = vmatprep.subr.mxu0 %v577_v40  ;;  %v767_v39 = vld [vmem:[#allocation5 + $0x160] sm:$0xff] }
  0x5b   : > { %1236 = vmatpush3.msra.mxu0 %v577_v40  ;;  %1217 = vmatpush3.msra.mxu1 %v586_v58  ;;  %v766_v40 = vld [vmem:[#allocation5 + $0x158] sm:$0xff] }
  0x5c   : > { %1237 = vmatprep.subr.mxu0 %v576_v41  ;;  %1218 = vmatprep.subr.mxu1 %v585_v60 }
  0x5d   : > { %1238 = vmatpush3.msra.mxu0 %v576_v41  ;;  %1219 = vmatpush3.msra.mxu1 %v585_v60  ;;  %v765_v41 = vld [vmem:[#allocation5 + $0x150] sm:$0xff] }
  0x5e   : > { %1239 = vmatprep.subr.mxu0 %v575_v43  ;;  %1220 = vmatprep.subr.mxu1 %v584_v62 }
  0x5f   : > { %1240 = vmatpush3.msra.mxu0 %v575_v43  ;;  %1221 = vmatpush3.msra.mxu1 %v584_v62  ;;  %v763_v43 = vld [vmem:[#allocation5 + $0x140] sm:$0xff] }
  0x60   : > { %1241 = vmatprep.subr.mxu0 %v574_v45  ;;  %1222 = vmatprep.subr.mxu1 %v583_v0 }
  0x61   : > { %1242 = vmatpush3.msra.mxu0 %v574_v45  ;;  %1223 = vmatpush3.msra.mxu1 %v583_v0  ;;  %v761_v45 = vld [vmem:[#allocation5 + $0x130] sm:$0xff] }
  0x62   : > { %1243 = vmatprep.subr.mxu0 %v573_v47  ;;  %1224 = vmatprep.subr.mxu1 %v582_v2 }
  0x63   : > { %1244 = vmatpush3.msra.mxu0 %v573_v47  ;;  %1225 = vmatpush3.msra.mxu1 %v582_v2  ;;  %v759_v47 = vld [vmem:[#allocation5 + $0x120] sm:$0xff] }
  0x64   : > { %1245 = vmatprep.subr.mxu0 %v572_v49  ;;  %1226 = vmatprep.subr.mxu1 %v581_v4 }
  0x65   : > { %1246 = vmatpush3.msra.mxu0 %v572_v49  ;;  %1227 = vmatpush3.msra.mxu1 %v581_v4  ;;  %v757_v49 = vld [vmem:[#allocation5 + $0x110] sm:$0xff] }
  0x66   : > { %1247 = vmatprep.subr.mxu0 %v571_v51  ;;  %1228 = vmatprep.subr.mxu1 %v580_v6 }
  0x67   : > { %1248 = vmatpush3.msra.mxu0 %v571_v51  ;;  %1229 = vmatpush3.msra.mxu1 %v580_v6  ;;  %v755_v51 = vld [vmem:[#allocation5 + $0x100] sm:$0xff] }
  0x68   : > { %1249 = vmatprep.subr.mxu0 %v570_v53  ;;  %1230 = vmatprep.subr.mxu1 %v579_v7 }
  0x69   : > { %1250 = vmatpush3.msra.mxu0 %v570_v53  ;;  %1231 = vmatpush3.msra.mxu1 %v579_v7 }
  0x6a   : > { %1251 = vmatprep.subr.mxu0 %v569_v55  ;;  %1270 = vmatprep.subr.mxu1 %v770_v8 }
  0x6b   : > { %1252 = vmatpush3.msra.mxu0 %v569_v55 }
  0x6c   : > { %1253 = vmatprep.subr.mxu0 %v568_v57 }
  0x6d   : > { %1254 = vmatpush3.msra.mxu0 %v568_v57 }
  0x6e   : > { %1255 = vmatprep.subr.mxu0 %v567_v59 }
  0x6f   : > { %1256 = vmatpush3.msra.mxu0 %v567_v59 }
  0x70   : > { %1257 = vmatprep.subr.mxu0 %v566_v61 }
  0x71   : > { %1258 = vmatpush3.msra.mxu0 %v566_v61 }
  0x72   : > { %1259 = vmatprep.subr.mxu0 %v565_v63 }
  0x73   : > { %1260 = vmatpush3.msra.mxu0 %v565_v63  ;;  %v1043_v63 = vld [vmem:[%s1759_s4] ss:$0 sm:$0xff] }
  0x74   : > { %1261 = vmatprep.subr.mxu0 %v564_v1 }
  0x75   : > { %1262 = vmatpush3.msra.mxu0 %v564_v1 }
  0x76   : > { %1263 = vmatprep.subr.mxu0 %v563_v3 }
  0x77   : > { %1264 = vmatpush3.msra.mxu0 %v563_v3 }
  0x78   : > { %1265 = vmatprep.subr.mxu0 %v562_v5 }
  0x79   : > { %1266 = vmatpush3.msra.mxu0 %v562_v5 }
 0x107   : > { %v1157_v9 = vpop.f32.mrf.mxu0  ;;  %v1178_v10 = vpop.f32.mrf.mxu1 }
 0x108   : > { %v440_v13 = vadd.f32 %v1178_v10, %v1157_v9 }
 0x109   : > { %v355_v11 = vpop.f32.mrf.mxu0  ;;  %v434_v12 = vpop.f32.mrf.mxu1 }
 0x10a   : > { %v435_v16 = vadd.f32 %v434_v12, %v355_v11 }
 0x11a   : > { %v1199_v14 = vpop.f32.mrf.mxu0 }
 0x11b   : > { %v539_v17 = vadd.f32 %v1199_v14, %v440_v13 }
 0x11c   : > { %v529_v18 = vpop.f32.mrf.mxu0 }
 0x11d   : > { %v1659_v19 = vadd.f32 %v1040_v15, %v539_v17  ;;  %v538_v20 = vadd.f32 %v529_v18, %v435_v16 }
 0x11f   : > { %v550_v21 = vmax.f32 %v1659_v19, 0.0  ;;  %v1662_v22 = vadd.f32 %v1040_v15, %v538_v20 }
 0x121   : > { %v555_v23 = vrot.slane %v550_v21, 7  ;;  %v549_v24 = vmax.f32 %v1662_v22, 0.0 }
 0x123   : > { %v1667_v25 = vsel %vm553_vm3, %v555_v23, 0.0  ;;  %v554_v26 = vrot.slane %v549_v24, 7 }
 0x124   : > { %v600_v29 = vrot.slane %v1667_v25, 1  ;;  %v774_v52 = vrot.slane %v1667_v25, 2 }
 0x125   : > { %1267 = vmatprep.mubr.msk.f32.mxu0 %vm1041_vm4, %v554_v26  ;;  %v1671_v27 = vsel %vm553_vm3, %v554_v26, %v555_v23  ;;  %v560_v28 = vsel %vm553_vm3, 0.0, %v554_v26 }
 0x126   : > { %v598_v30 = vrot.slane %v1671_v27, 1  ;;  %1268 = vmatmul.mubr.f32.vlgmr.msra.gmra.mxu0 %v1671_v27  ;;  %v772_v31 = vrot.slane %v1671_v27, 2  ;;  %v597_v32 = vrot.slane %v560_v28, 1  ;;  %v771_v33 = vrot.slane %v560_v28, 2 }
 0x128   : > { %v599_v34 = vsel %vm278_vm0, %v597_v32, %v598_v30  ;;  %v601_v35 = vsel %vm278_vm0, %v598_v30, %v600_v29  ;;  %v773_v37 = vsel %vm453_vm2, %v771_v33, %v772_v31  ;;  %v775_v53 = vsel %vm453_vm2, %v772_v31, %v774_v52 }
 0x129   : > { %1232 = vmatprep.mubr.f32.mxu1 %v599_v34 }
 0x12a   : > { %1233 = vmatmul.mubr.f32.vlgmr.msra.gmra.mxu1 %v601_v35 }
 0x12b   : > { %1271 = vmatpush3.msra.mxu1 %v770_v8  ;;  %1302 = vmatprep.mubr.f32.mxu1 %v773_v37 }
 0x12c   : > { %1272 = vmatprep.subr.mxu1 %v769_v36 }
 0x12d   : > { %1273 = vmatpush3.msra.mxu1 %v769_v36 }
 0x12e   : > { %1274 = vmatprep.subr.mxu1 %v768_v38 }
 0x12f   : > { %1275 = vmatpush3.msra.mxu1 %v768_v38 }
 0x130   : > { %1276 = vmatprep.subr.mxu1 %v767_v39 }
 0x131   : > { %1277 = vmatpush3.msra.mxu1 %v767_v39 }
 0x132   : > { %1278 = vmatprep.subr.mxu1 %v766_v40 }
 0x133   : > { %1279 = vmatpush3.msra.mxu1 %v766_v40 }
 0x134   : > { %1280 = vmatprep.subr.mxu1 %v765_v41 }
 0x135   : > { %1281 = vmatpush3.msra.mxu1 %v765_v41 }
 0x136   : > { %1282 = vmatprep.subr.mxu1 %v764_v42 }
 0x137   : > { %1283 = vmatpush3.msra.mxu1 %v764_v42 }
 0x138   : > { %1284 = vmatprep.subr.mxu1 %v763_v43 }
 0x139   : > { %1285 = vmatpush3.msra.mxu1 %v763_v43 }
 0x13a   : > { %1286 = vmatprep.subr.mxu1 %v762_v44 }
 0x13b   : > { %1287 = vmatpush3.msra.mxu1 %v762_v44 }
 0x13c   : > { %1288 = vmatprep.subr.mxu1 %v761_v45 }
 0x13d   : > { %1289 = vmatpush3.msra.mxu1 %v761_v45 }
 0x13e   : > { %1290 = vmatprep.subr.mxu1 %v760_v46 }
 0x13f   : > { %1291 = vmatpush3.msra.mxu1 %v760_v46 }
 0x140   : > { %1292 = vmatprep.subr.mxu1 %v759_v47 }
 0x141   : > { %1293 = vmatpush3.msra.mxu1 %v759_v47 }
 0x142   : > { %1294 = vmatprep.subr.mxu1 %v758_v48 }
 0x143   : > { %1295 = vmatpush3.msra.mxu1 %v758_v48 }
 0x144   : > { %1296 = vmatprep.subr.mxu1 %v757_v49 }
 0x145   : > { %1297 = vmatpush3.msra.mxu1 %v757_v49 }
 0x146   : > { %1298 = vmatprep.subr.mxu1 %v756_v50 }
 0x147   : > { %1299 = vmatpush3.msra.mxu1 %v756_v50 }
 0x148   : > { %1300 = vmatprep.subr.mxu1 %v755_v51 }
 0x149   : > { %1301 = vmatpush3.msra.mxu1 %v755_v51 }
 0x14a   : > { %1303 = vmatmul.mubr.f32.vlgmr.msra.gmra.mxu1 %v775_v53 }
 0x1e6   : > { %v1269_v55 = vpop.f32.mrf.mxu0 }
 0x1e8   : > { %v745_v57 = vpop.f32.mrf.mxu0 }
 0x1ea   : > { %v1234_v54 = vpop.f32.mrf.mxu1 }
 0x1eb   : > { %v751_v61 = vadd.f32 %v1269_v55, %v1234_v54 }
 0x1ec   : > { %v670_v56 = vpop.f32.mrf.mxu1 }
 0x1ed   : > { %v746_v59 = vadd.f32 %v745_v57, %v670_v56 }
 0x20a   : > { %v1304_v58 = vpop.f32.mrf.mxu1 }
 0x20b   : > { %v854_v0 = vadd.f32 %v1304_v58, %v751_v61 }
 0x20c   : > { %v844_v60 = vpop.f32.mrf.mxu1 }
 0x20d   : > { %v853_v62 = vadd.f32 %v844_v60, %v746_v59  ;;  %v863_v2 = vadd.f32 %v1043_v63, %v854_v0 }
 0x20f   : > { %v862_v1 = vadd.f32 %v1043_v63, %v853_v62 }
 0x211   : > { %864 = vrot.lane.b32.xlu0 %v862_v1, %s1507_s12 }
 0x215   : > { %866 = vrot.lane.b32.xlu0 %v863_v2, %s1507_s12 }
 0x283   : > { %v865_v3 = vpop.permute.xlu0 %864 }
 0x284   : > { %v868_v4 = vmax.f32 %v862_v1, %v865_v3 }
 0x286   : > { %870 = vrot.lane.b32.xlu1 %v868_v4, %s1508_s13 }
 0x287   : > { %v867_v5 = vpop.permute.xlu0 %866 }
 0x288   : > { %v869_v6 = vmax.f32 %v863_v2, %v867_v5 }
 0x28a   : > { %872 = vrot.lane.b32.xlu1 %v869_v6, %s1508_s13 }
 0x2f8   : > { %v871_v7 = vpop.permute.xlu1 %870 }
 0x2f9   : > { %v874_v8 = vmax.f32 %v868_v4, %v871_v7 }
 0x2fb   : > { %876 = vrot.lane.b32.xlu0 %v874_v8, %s1509_s14 }
 0x2fc   : > { %v873_v9 = vpop.permute.xlu1 %872 }
 0x2fd   : > { %v875_v10 = vmax.f32 %v869_v6, %v873_v9 }
 0x2ff   : > { %878 = vrot.lane.b32.xlu1 %v875_v10, %s1509_s14 }
 0x36d   : > { %v877_v11 = vpop.permute.xlu0 %876 }
 0x36e   : > { %v880_v12 = vmax.f32 %v874_v8, %v877_v11 }
 0x370   : > { %882 = vrot.lane.b32.xlu0 %v880_v12, %s1510_s15 }
 0x371   : > { %v879_v13 = vpop.permute.xlu1 %878 }
 0x372   : > { %v881_v14 = vmax.f32 %v875_v10, %v879_v13 }
 0x374   : > { %884 = vrot.lane.b32.xlu1 %v881_v14, %s1510_s15 }
 0x3e2   : > { %v883_v15 = vpop.permute.xlu0 %882 }
 0x3e3   : > { %v886_v16 = vmax.f32 %v880_v12, %v883_v15 }
 0x3e5   : > { %v888_v17 = vsub.f32 %v862_v1, %v886_v16 }
 0x3e6   : > { %v885_v18 = vpop.permute.xlu1 %884 }
 0x3e7   : > { %v890_v20 = vmul.f32 1.442695, %v888_v17  ;;  %v887_v23 = vmax.f32 %v881_v14, %v885_v18 }
 0x3e9   : > { %1373 = vpow2.f32 %v890_v20  ;;  %v889_v25 = vsub.f32 %v863_v2, %v887_v23 }
 0x3eb   : > { %v892_v26 = vmul.f32 1.442695, %v889_v25 }
 0x3ed   : > { %1375 = vpow2.f32 %v892_v26 }
 0x3f6   : > { %v1374_v27 = vpop.eup %1373 }
 0x3f7   : > { %894 = vrot.lane.b32.xlu0 %v1374_v27, %s1507_s12 }
 0x3fa   : > { %v1376_v28 = vpop.eup %1375 }
 0x3fb   : > { %896 = vrot.lane.b32.xlu1 %v1376_v28, %s1507_s12 }
 0x469   : > { %v895_v29 = vpop.permute.xlu0 %894 }
 0x46a   : > { %v898_v30 = vadd.f32 %v1374_v27, %v895_v29 }
 0x46c   : > { %900 = vrot.lane.b32.xlu0 %v898_v30, %s1508_s13 }
 0x46d   : > { %v897_v31 = vpop.permute.xlu1 %896 }
 0x46e   : > { %v899_v32 = vadd.f32 %v1376_v28, %v897_v31 }
 0x470   : > { %902 = vrot.lane.b32.xlu1 %v899_v32, %s1508_s13 }
 0x4de   : > { %v901_v33 = vpop.permute.xlu0 %900 }
 0x4df   : > { %v904_v34 = vadd.f32 %v901_v33, %v898_v30 }
 0x4e1   : > { %906 = vrot.lane.b32.xlu0 %v904_v34, %s1509_s14 }
 0x4e2   : > { %v903_v35 = vpop.permute.xlu1 %902 }
 0x4e3   : > { %v905_v36 = vadd.f32 %v903_v35, %v899_v32 }
 0x4e5   : > { %908 = vrot.lane.b32.xlu1 %v905_v36, %s1509_s14 }
 0x553   : > { %v907_v37 = vpop.permute.xlu0 %906 }
 0x554   : > { %v910_v38 = vadd.f32 %v907_v37, %v904_v34 }
 0x556   : > { %912 = vrot.lane.b32.xlu0 %v910_v38, %s1510_s15 }
 0x557   : > { %v909_v39 = vpop.permute.xlu1 %908 }
 0x558   : > { %v911_v40 = vadd.f32 %v909_v39, %v905_v36 }
 0x55a   : > { %914 = vrot.lane.b32.xlu1 %v911_v40, %s1510_s15 }
 0x5c8   : > { %v913_v41 = vpop.permute.xlu0 %912 }
 0x5c9   : > { %v916_v42 = vadd.f32 %v913_v41, %v910_v38 }
 0x5cb   : > { %1377 = vrcp.f32 %v916_v42 }
 0x5cc   : > { %v915_v43 = vpop.permute.xlu1 %914 }
 0x5cd   : > { %v917_v44 = vadd.f32 %v915_v43, %v911_v40 }
 0x5cf   : > { %1379 = vrcp.f32 %v917_v44 }
 0x5d8   : > { %v1378_v45 = vpop.eup %1377 }
 0x5d9   : > { %v920_v46 = vmul.f32 %v1378_v45, %v1374_v27 }
 0x5db   : > { %v922_v47 = vmul.f32 %v920_v46, %v549_v24 }
 0x5dc   : > { %v1380_v48 = vpop.eup %1379 }
 0x5dd   : > { %v921_v49 = vmul.f32 %v1380_v48, %v1376_v28  ;;  %924 = vst [vmem:[%s247_s25] sm:$0xff] %v922_v47 }
 0x5df   : > { %v923_v50 = vmul.f32 %v921_v49, %v550_v21 }
 0x5e1   : > { %925 = vst [vmem:[%s247_s25 + $0x8] sm:$0xff] %v923_v50 }
 0x5e2   : > { %1446 = shalt.err (!%p1443_p3)
}
 0x5e3   : > { %s1447_s13 = scalar_lea.hbm %s1708_s7, 256  ;;  %s1451_s16 = scalar_lea.hbm %s1760_s5, 512 }
 0x5e4   : > { %p1448_p2 = scmp.ne.s32.totalorder %s1708_s7, %s1447_s13  ;;  %p1452_p7 = scmp.lt.s32.totalorder %s1708_s7, %s1760_s5 }
 0x5e5   : > { %p1453_p6 = scmp.lt.s32.totalorder %s1451_s16, %s1447_s13 }
 0x5e6   : > { %p1449_p4 = pnand %p1448_p2, %p1581_p5 }
 0x5e7   : > { %p1454_p9 = por %p1453_p6, %p1452_p7 }
 0x5e8   : > { %p1450_p13 = pneg %p1449_p4 }
 0x5ea   : > { %p1455_p10 = pnand %p1454_p9, %p1450_p13 }
 0x5ec   : > { %1458 = shalt.err (!%p1455_p10)
}
 0x5ed   : > { %s1512_s25 = smov 128  }
 0x5ee   : > { %1314 = dma.vmem_to_hbm [thread:$0]  (%p1581_p5), %s1712_s26, 256, %s1708_s7, %s1714_s22, %s1512_s25, %s1512_s25, %s1507_s12  }
 0x5ef PF: > { %p1331_p12 = scmp.ge.s32.totalorder %s1501_s21, 2  ;;  %s955_s30 = sand.u32 1, %s1489_s18  }
 0x5f0   : > { %p1770_p8 = scmp.ne.s32.totalorder %s1763_s29, 0  ;;  %s956_s6 = scalar_lea.sflag [#allocation4], %s955_s30 }
 0x5f2   : > { %p1324_p11 = pnand %p1331_p12, %p1770_p8 }
 0x5f4   : > { %p1325_p0 = pneg %p1324_p11 }
 0x5f6   : > { %1484 = dma.done.wait (%p1325_p0), %s956_s6, 256  }
 0x5f7   : > { %1486 = vsyncadd (%p1325_p0), %s956_s6, 4294967040  ;;  %p17_p1 = scmp.ge.s32.totalorder %s1568_s24, 4   ;;  %s1771_s18 = smov %s1493_s19 }
 0x5f8   : > { %s1772_s19 = smov %s1497_s20  ;;  %s1773_s20 = smov %s1579_s27 }
 0x5f9   : > { %s1774_s21 = smov %s1568_s24  ;;  %19 = sbr.rel (!%p17_p1) target bundleno = 5 (0x5), region = 88 }
 0x5fe   :  { %961 = vsyncpa [#allocation3], 1 }
 0x5ff   :  { %963 = vsyncpa [#allocation3 + $0x1], 1 }
 0x600   :  { %964 = vsyncpa [#allocation6], 1 }
 0x601   :  { %965 = vsyncpa [#allocation4], 1 }
 0x602   :  { %967 = vsyncpa [#allocation4 + $0x1], 1 }

// kernel: tpu_custom_call.1
= control target key start
LH: loop header
LB: loop body
LE: loop exit
PB: predicated region body
PF: predicated region fallthrough
CT: control target
= control target key end

     0   :  { %10 = vsyncpa [#allocation3], 0  ;;  %s1755_s0 = inlined_call_operand.vmem [shape: f32[2,18,72], index: 0, kind: input, shape index: {}]   ;;  %s1756_s1 = inlined_call_operand.hbm [shape: f32[3,72,128], index: 1, kind: input, shape index: {}]   ;;  %s1757_s2 = inlined_call_operand.vmem [shape: f32[1,128], index: 2, kind: input, shape index: {}]   ;;  %s1758_s3 = inlined_call_operand.hbm [shape: f32[3,128,128], index: 3, kind: input, shape index: {}]   ;;  %s1759_s4 = inlined_call_operand.vmem [shape: f32[1,128], index: 4, kind: input, shape index: {}]   ;;  %s1760_s5 = inlined_call_operand.hbm [shape: f32[2,16,128], index: 5, kind: output, shape index: {}]  }
   0x1   :  { %11 = vsyncpa [#allocation6], 0 }
   0x2   :  { %12 = vsyncpa [#allocation4], 0 }
   0x3   :  { %14 = vsyncpa [#allocation4 + $0x1], 0  ;;  %s1543_s18 = smov 0   ;;  %s1545_s19 = smov 0  }
   0x4   :  { %s1547_s20 = smov 0   ;;  %s1549_s21 = smov 0  }
   0x5 LB: > { %s1564_s22 = sadd.s32 4294967295, %s1501_s21   ;;  %s1024_s23 = sadd.s32 4294967294, %s1501_s21   ;;  %s1501_s21 = sphi %s1549_s21, %s1774_s21   ;;  %s1497_s20 = sphi %s1547_s20, %s1773_s20   ;;  %s1493_s19 = sphi %s1545_s19, %s1772_s19   ;;  %s1489_s18 = sphi %s1543_s18, %s1771_s18  }
   0x6   : > { %s1568_s24 = sadd.s32 1, %s1501_s21   ;;  %s137_s25 = sadd.s32 1, %s1497_s20 }
   0x7   : > { %s134_s26 = ssub.s32 %s1501_s21, %s1568_s24  ;;  %p147_p0 = scmp.ne.s32.totalorder %s1497_s20, %s1493_s19 }
   0x8   : > { %p135_p1 = scmp.eq.s32.totalorder %s134_s26, 0  ;;  %p148_p2 = scmp.eq.s32.totalorder %s1564_s22, 1 }
   0x9   : > { %p153_p3 = scmp.ne.s32.totalorder %s1493_s19, %s1489_s18  ;;  %p154_p4 = scmp.eq.s32.totalorder %s1024_s23, 1 }
   0xa   : > { %s1579_s27 = scalar_select %p135_p1, %s1497_s20, %s137_s25  }
   0xb   : > { %p1581_p5 = por %p148_p2, %p147_p0  ;;  %p1585_p6 = por %p154_p4, %p153_p3 }
   0xc   : > { %p1025_p7 = scmp.ge.s32.totalorder %s1501_s21, 1  ;;  %p161_p8 = scmp.lt.s32.totalorder %s1501_s21, 3 }
   0xd   : > { %s1763_s29 = scalar_select %p1585_p6, 1, 0 }
   0xe   : > { %p1761_p9 = scmp.eq.s32.totalorder %s1564_s22, 0  ;;  %p1592_p10 = pnand %p1025_p7, %p161_p8 }
   0xf   : > { %s1503_s6 = smov [#allocation2]   ;;  %s1504_s9 = smov [#allocation5]  }
  0x10   : > { %s173_s7 = sshll.u32 %s1503_s6, 4  ;;  %p1316_p11 = pneg %p1592_p10  ;;  %s174_s7 = int_to_ptr.vmem [resolvable:$true] %s173_s7 }
  0x11   : > { %s189_s10 = sshll.u32 %s1504_s9, 4  ;;  %s1392_s11 = scalar_lea.vmem %s174_s7, 3456  ;;  %s190_s10 = int_to_ptr.vmem [resolvable:$true] %s189_s10 }
  0x12   : > { %p1600_p12 = pnand %p1761_p9, %p1316_p11  ;;  %p1393_p0 = scmp.ne.s32.totalorder %s174_s7, %s1392_s11 }
  0x13   : > { %p1400_p3 = scmp.lt.s32.totalorder %s174_s7, %s174_s7  ;;  %p1401_p4 = scmp.lt.s32.totalorder %s1392_s11, %s1392_s11 }
  0x14   : > { %p1383_p13 = pneg %p1600_p12 }
  0x15   : > { %p1402_p7 = por %p1401_p4, %p1400_p3 }
  0x16   : > { %p1395_p1 = pnand %p1393_p0, %p1383_p13 }
  0x18   : > { %p1396_p2 = pneg %p1395_p1 }
  0x1a   : > { %p1403_p8 = pnand %p1402_p7, %p1396_p2 }
  0x1c   : > { %1406 = shalt.err (!%p1403_p8)
}
  0x1d   : > { %s1505_s12 = smov 128   ;;  %s1506_s13 = smov 8  }
  0x1e   : > { %1319 = dma.hbm_to_vmem [thread:$0]  (!%p1600_p12), %s1756_s1, 3456, %s174_s7, [#allocation3], %s1505_s12, %s1505_s12, %s1506_s13  }
  0x1f   : > { %s1418_s16 = scalar_lea.vmem %s190_s10, 6144  ;;  %p1426_p9 = scmp.lt.s32.totalorder %s190_s10, %s190_s10 }
  0x20   : > { %p1419_p11 = scmp.ne.s32.totalorder %s190_s10, %s1418_s16  ;;  %p1427_p6 = scmp.lt.s32.totalorder %s1418_s16, %s1418_s16 }
  0x22   : > { %p1421_p0 = pnand %p1419_p11, %p1383_p13  ;;  %p1428_p3 = por %p1427_p6, %p1426_p9 }
  0x24   : > { %p1422_p1 = pneg %p1421_p0 }
  0x26   : > { %p1429_p2 = pnand %p1428_p3, %p1422_p1 }
  0x28   : > { %1432 = shalt.err (!%p1429_p2)
}
  0x29   : > { %1322 = dma.hbm_to_vmem [thread:$0]  (!%p1600_p12), %s1758_s3, 6144, %s190_s10, [#allocation6], %s1505_s12, %s1505_s12, %s1506_s13  }
  0x2a   : > { %216 = sbr.rel (%p1592_p10) target bundleno = 1519 (0x5ef), region = 40  ;;  %p1766_p4 = scmp.eq.s32.totalorder (!%p1592_p10), %s1564_s22, 0 }
  0x2f   : > { %1476 = dma.done.wait (%p1766_p4), [#allocation3], 3456   ;;  %p1767_p13 = pmov %p1766_p4 }
  0x30   : > { %p1768_p7 = pmov %p1766_p4 }
  0x31   : > { %1478 = vsyncadd (%p1767_p13), [#allocation3], 4294963840 }
  0x32   : > { %1480 = dma.done.wait (%p1768_p7), [#allocation6], 6144   ;;  %p1769_p6 = pmov %p1766_p4 }
  0x33   : > { %p248_p9 = scmp.lt.s32.totalorder %s1564_s22, 1  ;;  %v274_v0 = vld [vmem:[#allocation2 + $0x88] sm:$0xff]  ;;  %v264_v1 = vld [vmem:[#allocation2 + $0x40] sm:$0xff]  ;;  %v263_v3 = vld [vmem:[#allocation2 + $0x38] sm:$0xff]  ;;  %vm278_vm0 = vcmask 1046528   ;;  %vm284_vm1 = vcmask 588800  }
  0x34   : > { %1482 = vsyncadd (%p1769_p6), [#allocation6], 4294961152  ;;  %v273_v2 = vld [vmem:[#allocation2 + $0x80] sm:$0xff]  ;;  %1137 = vmatprep.subr.mxu0 %v274_v0  ;;  %1158 = vmatprep.subr.mxu1 %v264_v1  ;;  %v272_v4 = vld [vmem:[#allocation2 + $0x78] sm:$0xff]  ;;  %vm453_vm2 = vcmask 1045504   ;;  %vm553_vm3 = vcmask 1040384  }
  0x35   : > { %s249_s25 = scalar_select %p248_p9, %s1564_s22, 1  ;;  %1138 = vmatpush3.msra.mxu0 %v274_v0  ;;  %1159 = vmatpush3.msra.mxu1 %v264_v1  ;;  %v262_v5 = vld [vmem:[#allocation2 + $0x30] sm:$0xff]  ;;  %v261_v7 = vld [vmem:[#allocation2 + $0x28] sm:$0xff]  ;;  %v260_v9 = vld [vmem:[#allocation2 + $0x20] sm:$0xff] }
  0x36   : > { %1139 = vmatprep.subr.mxu0 %v273_v2  ;;  %1160 = vmatprep.subr.mxu1 %v263_v3  ;;  %v271_v6 = vld [vmem:[#allocation2 + $0x70] sm:$0xff]  ;;  %v270_v8 = vld [vmem:[#allocation2 + $0x68] sm:$0xff]  ;;  %v269_v10 = vld [vmem:[#allocation2 + $0x60] sm:$0xff]  ;;  %s1507_s12 = smov 8   ;;  %s1508_s13 = smov 16  }
  0x37   : > { %s1305_s26 = smul.u32 24, %s249_s25  ;;  %1140 = vmatpush3.msra.mxu0 %v273_v2  ;;  %1161 = vmatpush3.msra.mxu1 %v263_v3  ;;  %v259_v11 = vld [vmem:[#allocation2 + $0x18] sm:$0xff]  ;;  %v258_v15 = vld [vmem:[#allocation2 + $0x10] sm:$0xff]  ;;  %v257_v20 = vld [vmem:[#allocation2 + $0x8] sm:$0xff]  ;;  %s1509_s14 = smov 32  }
  0x38   : > { %1141 = vmatprep.subr.mxu0 %v272_v4  ;;  %1162 = vmatprep.subr.mxu1 %v262_v5  ;;  %v268_v14 = vld [vmem:[#allocation2 + $0x58] sm:$0xff]  ;;  %v267_v19 = vld [vmem:[#allocation2 + $0x50] sm:$0xff]  ;;  %v266_v22 = vld [vmem:[#allocation2 + $0x48] sm:$0xff]  ;;  %s1510_s15 = smov 64   ;;  %s245_s16 = sand.u32 1, %s1493_s19  }
  0x39   : > { %s252_s7 = scalar_lea.vmem %s1755_s0, %s1305_s26  ;;  %1142 = vmatpush3.msra.mxu0 %v272_v4  ;;  %1163 = vmatpush3.msra.mxu1 %v262_v5  ;;  %v256_v23 = vld [vmem:[#allocation2] sm:$0xff]  ;;  %v452_v28 = vld [vmem:[#allocation2 + $0xd0] sm:$0xff]  ;;  %v451_v30 = vld [vmem:[#allocation2 + $0xc8] sm:$0xff]  ;;  %s1032_s17 = sshll.u32 %s245_s16, 4 }
  0x3a   : > { %1143 = vmatprep.subr.mxu0 %v271_v6  ;;  %1164 = vmatprep.subr.mxu1 %v261_v7  ;;  %v253_v12 = vld [vmem:[%s252_s7] sm:$0xff]  ;;  %v1637_v13 = vld [vmem:[%s252_s7 + $0x8] sm:$0xff]  ;;  %v1639_v16 = vld [vmem:[%s252_s7 + $0x10] sm:$0x3]  ;;  %s1049_s23 = sshll.u32 %s1564_s22, 8  ;;  %s247_s25 = scalar_lea.vmem [#allocation7], %s1032_s17 }
  0x3b   : > { %1144 = vmatpush3.msra.mxu0 %v271_v6  ;;  %1165 = vmatpush3.msra.mxu1 %v261_v7  ;;  %v279_v17 = vrot.slane %v253_v12, 1  ;;  %v280_v18 = vrot.slane %v1637_v13, 1  ;;  %v282_v21 = vrot.slane %v1639_v16, 1  ;;  %v454_v24 = vrot.slane %v253_v12, 2  ;;  %v450_v31 = vld [vmem:[#allocation2 + $0xc0] sm:$0xff]  ;;  %v449_v32 = vld [vmem:[#allocation2 + $0xb8] sm:$0xff]  ;;  %vm1041_vm4 = vmneg %vm553_vm3  ;;  %s1708_s7 = scalar_lea.hbm %s1760_s5, %s1049_s23 }
  0x3c   : > { %1145 = vmatprep.subr.mxu0 %v270_v8  ;;  %1166 = vmatprep.subr.mxu1 %v260_v9  ;;  %v455_v25 = vrot.slane %v1637_v13, 2  ;;  %v448_v33 = vld [vmem:[#allocation2 + $0xb0] sm:$0xff]  ;;  %v447_v34 = vld [vmem:[#allocation2 + $0xa8] sm:$0xff]  ;;  %v446_v35 = vld [vmem:[#allocation2 + $0xa0] sm:$0xff]  ;;  %v457_v36 = vrot.slane %v1639_v16, 2  ;;  %s940_s26 = sshll.u32 %s247_s25, 4  ;;  %s1712_s26 = int_to_ptr.vmem [resolvable:$true] %s940_s26 }
  0x3d   : > { %1146 = vmatpush3.msra.mxu0 %v270_v8  ;;  %1167 = vmatpush3.msra.mxu1 %v260_v9  ;;  %v281_v26 = vsel %vm278_vm0, %v279_v17, %v280_v18  ;;  %v283_v27 = vsel %vm278_vm0, %v280_v18, %v282_v21  ;;  %v445_v37 = vld [vmem:[#allocation2 + $0x98] sm:$0xff]  ;;  %v444_v38 = vld [vmem:[#allocation2 + $0x90] sm:$0xff]  ;;  %v576_v41 = vld [vmem:[#allocation5 + $0x70] sm:$0xff]  ;;  %s1714_s22 = scalar_lea.sflag [#allocation4], %s245_s16  ;;  %s1433_s8 = scalar_lea.vmem %s1712_s26, 256 }
  0x3e   : > { %1147 = vmatprep.subr.mxu0 %v269_v10  ;;  %1168 = vmatprep.subr.mxu1 %v259_v11  ;;  %v456_v29 = vsel %vm453_vm2, %v454_v24, %v455_v25  ;;  %v458_v39 = vsel %vm453_vm2, %v455_v25, %v457_v36  ;;  %v577_v40 = vld [vmem:[#allocation5 + $0x78] sm:$0xff]  ;;  %v575_v43 = vld [vmem:[#allocation5 + $0x68] sm:$0xff]  ;;  %v593_v44 = vld [vmem:[#allocation5 + $0xf0] sm:$0xff]  ;;  %p1434_p10 = scmp.ne.s32.totalorder %s1712_s26, %s1433_s8  ;;  %s1511_s9 = smov [#allocation7]  }
  0x3f   : > { %1148 = vmatpush3.msra.mxu0 %v269_v10  ;;  %1169 = vmatpush3.msra.mxu1 %v259_v11  ;;  %v594_v42 = vld [vmem:[#allocation5 + $0xf8] sm:$0xff]  ;;  %v574_v45 = vld [vmem:[#allocation5 + $0x60] sm:$0xff]  ;;  %v592_v46 = vld [vmem:[#allocation5 + $0xe8] sm:$0xff]  ;;  %s1437_s10 = sshll.u32 %s1511_s9, 4  ;;  %s1438_s10 = int_to_ptr.vmem [resolvable:$false] %s1437_s10 }
  0x40   : > { %1149 = vmatprep.subr.mxu0 %v268_v14  ;;  %1170 = vmatprep.subr.mxu1 %v258_v15  ;;  %v573_v47 = vld [vmem:[#allocation5 + $0x58] sm:$0xff]  ;;  %v591_v48 = vld [vmem:[#allocation5 + $0xe0] sm:$0xff]  ;;  %v572_v49 = vld [vmem:[#allocation5 + $0x50] sm:$0xff]  ;;  %p1435_p12 = pnand %p1434_p10, %p1581_p5  ;;  %s1439_s11 = scalar_lea.vmem %s1438_s10, 512 }
  0x41   : > { %1150 = vmatpush3.msra.mxu0 %v268_v14  ;;  %1171 = vmatpush3.msra.mxu1 %v258_v15  ;;  %v590_v50 = vld [vmem:[#allocation5 + $0xd8] sm:$0xff]  ;;  %v571_v51 = vld [vmem:[#allocation5 + $0x48] sm:$0xff]  ;;  %v589_v52 = vld [vmem:[#allocation5 + $0xd0] sm:$0xff]  ;;  %p1440_p11 = scmp.lt.s32.totalorder %s1712_s26, %s1438_s10  ;;  %p1441_p0 = scmp.lt.s32.totalorder %s1439_s11, %s1433_s8 }
  0x42   : > { %1151 = vmatprep.subr.mxu0 %v267_v19  ;;  %1172 = vmatprep.subr.mxu1 %v257_v20  ;;  %v570_v53 = vld [vmem:[#allocation5 + $0x40] sm:$0xff]  ;;  %v588_v54 = vld [vmem:[#allocation5 + $0xc8] sm:$0xff]  ;;  %v569_v55 = vld [vmem:[#allocation5 + $0x38] sm:$0xff]  ;;  %p1436_p8 = pneg %p1435_p12 }
  0x43   : > { %1152 = vmatpush3.msra.mxu0 %v267_v19  ;;  %1173 = vmatpush3.msra.mxu1 %v257_v20  ;;  %v587_v56 = vld [vmem:[#allocation5 + $0xc0] sm:$0xff]  ;;  %v568_v57 = vld [vmem:[#allocation5 + $0x30] sm:$0xff]  ;;  %v586_v58 = vld [vmem:[#allocation5 + $0xb8] sm:$0xff]  ;;  %p1442_p1 = por %p1441_p0, %p1440_p11 }
  0x44   : > { %1153 = vmatprep.subr.mxu0 %v266_v22  ;;  %1174 = vmatprep.subr.mxu1 %v256_v23  ;;  %v567_v59 = vld [vmem:[#allocation5 + $0x28] sm:$0xff]  ;;  %v585_v60 = vld [vmem:[#allocation5 + $0xb0] sm:$0xff]  ;;  %v566_v61 = vld [vmem:[#allocation5 + $0x20] sm:$0xff] }
  0x45   : > { %1154 = vmatpush3.msra.mxu0 %v266_v22  ;;  %1155 = vmatprep.mubr.msk.f32.mxu0 %vm284_vm1, %v281_v26  ;;  %v584_v62 = vld [vmem:[#allocation5 + $0xa8] sm:$0xff]  ;;  %v565_v63 = vld [vmem:[#allocation5 + $0x18] sm:$0xff]  ;;  %v583_v0 = vld [vmem:[#allocation5 + $0xa0] sm:$0xff]  ;;  %p1443_p3 = pnand %p1442_p1, %p1436_p8 }
  0x46   : > { %1175 = vmatpush3.msra.mxu1 %v256_v23  ;;  %1176 = vmatprep.mubr.msk.f32.mxu1 %vm284_vm1, %v253_v12  ;;  %v564_v1 = vld [vmem:[#allocation5 + $0x10] sm:$0xff]  ;;  %v582_v2 = vld [vmem:[#allocation5 + $0x98] sm:$0xff]  ;;  %v563_v3 = vld [vmem:[#allocation5 + $0x8] sm:$0xff] }
  0x47   : > { %1156 = vmatmul.mubr.msk.f32.vlgmr.msra.gmra.mxu0 %vm284_vm1, %v283_v27  ;;  %1177 = vmatmul.mubr.msk.f32.vlgmr.msra.gmra.mxu1 %vm284_vm1, %v1637_v13  ;;  %v581_v4 = vld [vmem:[#allocation5 + $0x90] sm:$0xff]  ;;  %v562_v5 = vld [vmem:[#allocation5] sm:$0xff]  ;;  %v580_v6 = vld [vmem:[#allocation5 + $0x88] sm:$0xff] }
  0x48   : > { %1179 = vmatprep.subr.mxu0 %v452_v28  ;;  %1197 = vmatprep.mubr.msk.f32.mxu0 %vm284_vm1, %v456_v29  ;;  %v579_v7 = vld [vmem:[#allocation5 + $0x80] sm:$0xff]  ;;  %v770_v8 = vld [vmem:[#allocation5 + $0x178] sm:$0xff]  ;;  %v1040_v15 = vld [vmem:[%s1757_s2] ss:$0 sm:$0xff] }
  0x49   : > { %1180 = vmatpush3.msra.mxu0 %v452_v28  ;;  %1200 = vmatprep.subr.mxu1 %v594_v42  ;;  %v769_v36 = vld [vmem:[#allocation5 + $0x170] sm:$0xff] }
  0x4a   : > { %1181 = vmatprep.subr.mxu0 %v451_v30  ;;  %1201 = vmatpush3.msra.mxu1 %v594_v42  ;;  %v764_v42 = vld [vmem:[#allocation5 + $0x148] sm:$0xff] }
  0x4b   : > { %1182 = vmatpush3.msra.mxu0 %v451_v30  ;;  %1202 = vmatprep.subr.mxu1 %v593_v44 }
  0x4c   : > { %1183 = vmatprep.subr.mxu0 %v450_v31  ;;  %1203 = vmatpush3.msra.mxu1 %v593_v44  ;;  %v762_v44 = vld [vmem:[#allocation5 + $0x138] sm:$0xff] }
  0x4d   : > { %1184 = vmatpush3.msra.mxu0 %v450_v31  ;;  %1204 = vmatprep.subr.mxu1 %v592_v46 }
  0x4e   : > { %1185 = vmatprep.subr.mxu0 %v449_v32  ;;  %1205 = vmatpush3.msra.mxu1 %v592_v46  ;;  %v760_v46 = vld [vmem:[#allocation5 + $0x128] sm:$0xff] }
  0x4f   : > { %1186 = vmatpush3.msra.mxu0 %v449_v32  ;;  %1206 = vmatprep.subr.mxu1 %v591_v48 }
  0x50   : > { %1187 = vmatprep.subr.mxu0 %v448_v33  ;;  %1207 = vmatpush3.msra.mxu1 %v591_v48  ;;  %v758_v48 = vld [vmem:[#allocation5 + $0x118] sm:$0xff] }
  0x51   : > { %1188 = vmatpush3.msra.mxu0 %v448_v33  ;;  %1208 = vmatprep.subr.mxu1 %v590_v50 }
  0x52   : > { %1189 = vmatprep.subr.mxu0 %v447_v34  ;;  %1209 = vmatpush3.msra.mxu1 %v590_v50  ;;  %v756_v50 = vld [vmem:[#allocation5 + $0x108] sm:$0xff] }
  0x53   : > { %1190 = vmatpush3.msra.mxu0 %v447_v34  ;;  %1210 = vmatprep.subr.mxu1 %v589_v52 }
  0x54   : > { %1191 = vmatprep.subr.mxu0 %v446_v35  ;;  %1211 = vmatpush3.msra.mxu1 %v589_v52 }
  0x55   : > { %1192 = vmatpush3.msra.mxu0 %v446_v35  ;;  %1212 = vmatprep.subr.mxu1 %v588_v54 }
  0x56   : > { %1193 = vmatprep.subr.mxu0 %v445_v37  ;;  %1213 = vmatpush3.msra.mxu1 %v588_v54 }
  0x57   : > { %1194 = vmatpush3.msra.mxu0 %v445_v37  ;;  %1214 = vmatprep.subr.mxu1 %v587_v56 }
  0x58   : > { %1195 = vmatprep.subr.mxu0 %v444_v38  ;;  %1215 = vmatpush3.msra.mxu1 %v587_v56 }
  0x59   : > { %1196 = vmatpush3.msra.mxu0 %v444_v38  ;;  %1216 = vmatprep.subr.mxu1 %v586_v58  ;;  %v768_v38 = vld [vmem:[#allocation5 + $0x168] sm:$0xff] }
  0x5a   : > { %1198 = vmatmul.mubr.msk.f32.vlgmr.msra.gmra.mxu0 %vm284_vm1, %v458_v39  ;;  %1235 = vmatprep.subr.mxu0 %v577_v40  ;;  %v767_v39 = vld [vmem:[#allocation5 + $0x160] sm:$0xff] }
  0x5b   : > { %1236 = vmatpush3.msra.mxu0 %v577_v40  ;;  %1217 = vmatpush3.msra.mxu1 %v586_v58  ;;  %v766_v40 = vld [vmem:[#allocation5 + $0x158] sm:$0xff] }
  0x5c   : > { %1237 = vmatprep.subr.mxu0 %v576_v41  ;;  %1218 = vmatprep.subr.mxu1 %v585_v60 }
  0x5d   : > { %1238 = vmatpush3.msra.mxu0 %v576_v41  ;;  %1219 = vmatpush3.msra.mxu1 %v585_v60  ;;  %v765_v41 = vld [vmem:[#allocation5 + $0x150] sm:$0xff] }
  0x5e   : > { %1239 = vmatprep.subr.mxu0 %v575_v43  ;;  %1220 = vmatprep.subr.mxu1 %v584_v62 }
  0x5f   : > { %1240 = vmatpush3.msra.mxu0 %v575_v43  ;;  %1221 = vmatpush3.msra.mxu1 %v584_v62  ;;  %v763_v43 = vld [vmem:[#allocation5 + $0x140] sm:$0xff] }
  0x60   : > { %1241 = vmatprep.subr.mxu0 %v574_v45  ;;  %1222 = vmatprep.subr.mxu1 %v583_v0 }
  0x61   : > { %1242 = vmatpush3.msra.mxu0 %v574_v45  ;;  %1223 = vmatpush3.msra.mxu1 %v583_v0  ;;  %v761_v45 = vld [vmem:[#allocation5 + $0x130] sm:$0xff] }
  0x62   : > { %1243 = vmatprep.subr.mxu0 %v573_v47  ;;  %1224 = vmatprep.subr.mxu1 %v582_v2 }
  0x63   : > { %1244 = vmatpush3.msra.mxu0 %v573_v47  ;;  %1225 = vmatpush3.msra.mxu1 %v582_v2  ;;  %v759_v47 = vld [vmem:[#allocation5 + $0x120] sm:$0xff] }
  0x64   : > { %1245 = vmatprep.subr.mxu0 %v572_v49  ;;  %1226 = vmatprep.subr.mxu1 %v581_v4 }
  0x65   : > { %1246 = vmatpush3.msra.mxu0 %v572_v49  ;;  %1227 = vmatpush3.msra.mxu1 %v581_v4  ;;  %v757_v49 = vld [vmem:[#allocation5 + $0x110] sm:$0xff] }
  0x66   : > { %1247 = vmatprep.subr.mxu0 %v571_v51  ;;  %1228 = vmatprep.subr.mxu1 %v580_v6 }
  0x67   : > { %1248 = vmatpush3.msra.mxu0 %v571_v51  ;;  %1229 = vmatpush3.msra.mxu1 %v580_v6  ;;  %v755_v51 = vld [vmem:[#allocation5 + $0x100] sm:$0xff] }
  0x68   : > { %1249 = vmatprep.subr.mxu0 %v570_v53  ;;  %1230 = vmatprep.subr.mxu1 %v579_v7 }
  0x69   : > { %1250 = vmatpush3.msra.mxu0 %v570_v53  ;;  %1231 = vmatpush3.msra.mxu1 %v579_v7 }
  0x6a   : > { %1251 = vmatprep.subr.mxu0 %v569_v55  ;;  %1270 = vmatprep.subr.mxu1 %v770_v8 }
  0x6b   : > { %1252 = vmatpush3.msra.mxu0 %v569_v55 }
  0x6c   : > { %1253 = vmatprep.subr.mxu0 %v568_v57 }
  0x6d   : > { %1254 = vmatpush3.msra.mxu0 %v568_v57 }
  0x6e   : > { %1255 = vmatprep.subr.mxu0 %v567_v59 }
  0x6f   : > { %1256 = vmatpush3.msra.mxu0 %v567_v59 }
  0x70   : > { %1257 = vmatprep.subr.mxu0 %v566_v61 }
  0x71   : > { %1258 = vmatpush3.msra.mxu0 %v566_v61 }
  0x72   : > { %1259 = vmatprep.subr.mxu0 %v565_v63 }
  0x73   : > { %1260 = vmatpush3.msra.mxu0 %v565_v63  ;;  %v1043_v63 = vld [vmem:[%s1759_s4] ss:$0 sm:$0xff] }
  0x74   : > { %1261 = vmatprep.subr.mxu0 %v564_v1 }
  0x75   : > { %1262 = vmatpush3.msra.mxu0 %v564_v1 }
  0x76   : > { %1263 = vmatprep.subr.mxu0 %v563_v3 }
  0x77   : > { %1264 = vmatpush3.msra.mxu0 %v563_v3 }
  0x78   : > { %1265 = vmatprep.subr.mxu0 %v562_v5 }
  0x79   : > { %1266 = vmatpush3.msra.mxu0 %v562_v5 }
 0x107   : > { %v1157_v9 = vpop.f32.mrf.mxu0  ;;  %v1178_v10 = vpop.f32.mrf.mxu1 }
 0x108   : > { %v440_v13 = vadd.f32 %v1178_v10, %v1157_v9 }
 0x109   : > { %v355_v11 = vpop.f32.mrf.mxu0  ;;  %v434_v12 = vpop.f32.mrf.mxu1 }
 0x10a   : > { %v435_v16 = vadd.f32 %v434_v12, %v355_v11 }
 0x11a   : > { %v1199_v14 = vpop.f32.mrf.mxu0 }
 0x11b   : > { %v539_v17 = vadd.f32 %v1199_v14, %v440_v13 }
 0x11c   : > { %v529_v18 = vpop.f32.mrf.mxu0 }
 0x11d   : > { %v1659_v19 = vadd.f32 %v1040_v15, %v539_v17  ;;  %v538_v20 = vadd.f32 %v529_v18, %v435_v16 }
 0x11f   : > { %v550_v21 = vmax.f32 %v1659_v19, 0.0  ;;  %v1662_v22 = vadd.f32 %v1040_v15, %v538_v20 }
 0x121   : > { %v555_v23 = vrot.slane %v550_v21, 7  ;;  %v549_v24 = vmax.f32 %v1662_v22, 0.0 }
 0x123   : > { %v1667_v25 = vsel %vm553_vm3, %v555_v23, 0.0  ;;  %v554_v26 = vrot.slane %v549_v24, 7 }
 0x124   : > { %v600_v29 = vrot.slane %v1667_v25, 1  ;;  %v774_v52 = vrot.slane %v1667_v25, 2 }
 0x125   : > { %1267 = vmatprep.mubr.msk.f32.mxu0 %vm1041_vm4, %v554_v26  ;;  %v1671_v27 = vsel %vm553_vm3, %v554_v26, %v555_v23  ;;  %v560_v28 = vsel %vm553_vm3, 0.0, %v554_v26 }
 0x126   : > { %v598_v30 = vrot.slane %v1671_v27, 1  ;;  %1268 = vmatmul.mubr.f32.vlgmr.msra.gmra.mxu0 %v1671_v27  ;;  %v772_v31 = vrot.slane %v1671_v27, 2  ;;  %v597_v32 = vrot.slane %v560_v28, 1  ;;  %v771_v33 = vrot.slane %v560_v28, 2 }
 0x128   : > { %v599_v34 = vsel %vm278_vm0, %v597_v32, %v598_v30  ;;  %v601_v35 = vsel %vm278_vm0, %v598_v30, %v600_v29  ;;  %v773_v37 = vsel %vm453_vm2, %v771_v33, %v772_v31  ;;  %v775_v53 = vsel %vm453_vm2, %v772_v31, %v774_v52 }
 0x129   : > { %1232 = vmatprep.mubr.f32.mxu1 %v599_v34 }
 0x12a   : > { %1233 = vmatmul.mubr.f32.vlgmr.msra.gmra.mxu1 %v601_v35 }
 0x12b   : > { %1271 = vmatpush3.msra.mxu1 %v770_v8  ;;  %1302 = vmatprep.mubr.f32.mxu1 %v773_v37 }
 0x12c   : > { %1272 = vmatprep.subr.mxu1 %v769_v36 }
 0x12d   : > { %1273 = vmatpush3.msra.mxu1 %v769_v36 }
 0x12e   : > { %1274 = vmatprep.subr.mxu1 %v768_v38 }
 0x12f   : > { %1275 = vmatpush3.msra.mxu1 %v768_v38 }
 0x130   : > { %1276 = vmatprep.subr.mxu1 %v767_v39 }
 0x131   : > { %1277 = vmatpush3.msra.mxu1 %v767_v39 }
 0x132   : > { %1278 = vmatprep.subr.mxu1 %v766_v40 }
 0x133   : > { %1279 = vmatpush3.msra.mxu1 %v766_v40 }
 0x134   : > { %1280 = vmatprep.subr.mxu1 %v765_v41 }
 0x135   : > { %1281 = vmatpush3.msra.mxu1 %v765_v41 }
 0x136   : > { %1282 = vmatprep.subr.mxu1 %v764_v42 }
 0x137   : > { %1283 = vmatpush3.msra.mxu1 %v764_v42 }
 0x138   : > { %1284 = vmatprep.subr.mxu1 %v763_v43 }
 0x139   : > { %1285 = vmatpush3.msra.mxu1 %v763_v43 }
 0x13a   : > { %1286 = vmatprep.subr.mxu1 %v762_v44 }
 0x13b   : > { %1287 = vmatpush3.msra.mxu1 %v762_v44 }
 0x13c   : > { %1288 = vmatprep.subr.mxu1 %v761_v45 }
 0x13d   : > { %1289 = vmatpush3.msra.mxu1 %v761_v45 }
 0x13e   : > { %1290 = vmatprep.subr.mxu1 %v760_v46 }
 0x13f   : > { %1291 = vmatpush3.msra.mxu1 %v760_v46 }
 0x140   : > { %1292 = vmatprep.subr.mxu1 %v759_v47 }
 0x141   : > { %1293 = vmatpush3.msra.mxu1 %v759_v47 }
 0x142   : > { %1294 = vmatprep.subr.mxu1 %v758_v48 }
 0x143   : > { %1295 = vmatpush3.msra.mxu1 %v758_v48 }
 0x144   : > { %1296 = vmatprep.subr.mxu1 %v757_v49 }
 0x145   : > { %1297 = vmatpush3.msra.mxu1 %v757_v49 }
 0x146   : > { %1298 = vmatprep.subr.mxu1 %v756_v50 }
 0x147   : > { %1299 = vmatpush3.msra.mxu1 %v756_v50 }
 0x148   : > { %1300 = vmatprep.subr.mxu1 %v755_v51 }
 0x149   : > { %1301 = vmatpush3.msra.mxu1 %v755_v51 }
 0x14a   : > { %1303 = vmatmul.mubr.f32.vlgmr.msra.gmra.mxu1 %v775_v53 }
 0x1e6   : > { %v1269_v55 = vpop.f32.mrf.mxu0 }
 0x1e8   : > { %v745_v57 = vpop.f32.mrf.mxu0 }
 0x1ea   : > { %v1234_v54 = vpop.f32.mrf.mxu1 }
 0x1eb   : > { %v751_v61 = vadd.f32 %v1269_v55, %v1234_v54 }
 0x1ec   : > { %v670_v56 = vpop.f32.mrf.mxu1 }
 0x1ed   : > { %v746_v59 = vadd.f32 %v745_v57, %v670_v56 }
 0x20a   : > { %v1304_v58 = vpop.f32.mrf.mxu1 }
 0x20b   : > { %v854_v0 = vadd.f32 %v1304_v58, %v751_v61 }
 0x20c   : > { %v844_v60 = vpop.f32.mrf.mxu1 }
 0x20d   : > { %v853_v62 = vadd.f32 %v844_v60, %v746_v59  ;;  %v863_v2 = vadd.f32 %v1043_v63, %v854_v0 }
 0x20f   : > { %v862_v1 = vadd.f32 %v1043_v63, %v853_v62 }
 0x211   : > { %864 = vrot.lane.b32.xlu0 %v862_v1, %s1507_s12 }
 0x215   : > { %866 = vrot.lane.b32.xlu0 %v863_v2, %s1507_s12 }
 0x283   : > { %v865_v3 = vpop.permute.xlu0 %864 }
 0x284   : > { %v868_v4 = vmax.f32 %v862_v1, %v865_v3 }
 0x286   : > { %870 = vrot.lane.b32.xlu1 %v868_v4, %s1508_s13 }
 0x287   : > { %v867_v5 = vpop.permute.xlu0 %866 }
 0x288   : > { %v869_v6 = vmax.f32 %v863_v2, %v867_v5 }
 0x28a   : > { %872 = vrot.lane.b32.xlu1 %v869_v6, %s1508_s13 }
 0x2f8   : > { %v871_v7 = vpop.permute.xlu1 %870 }
 0x2f9   : > { %v874_v8 = vmax.f32 %v868_v4, %v871_v7 }
 0x2fb   : > { %876 = vrot.lane.b32.xlu0 %v874_v8, %s1509_s14 }
 0x2fc   : > { %v873_v9 = vpop.permute.xlu1 %872 }
 0x2fd   : > { %v875_v10 = vmax.f32 %v869_v6, %v873_v9 }
 0x2ff   : > { %878 = vrot.lane.b32.xlu1 %v875_v10, %s1509_s14 }
 0x36d   : > { %v877_v11 = vpop.permute.xlu0 %876 }
 0x36e   : > { %v880_v12 = vmax.f32 %v874_v8, %v877_v11 }
 0x370   : > { %882 = vrot.lane.b32.xlu0 %v880_v12, %s1510_s15 }
 0x371   : > { %v879_v13 = vpop.permute.xlu1 %878 }
 0x372   : > { %v881_v14 = vmax.f32 %v875_v10, %v879_v13 }
 0x374   : > { %884 = vrot.lane.b32.xlu1 %v881_v14, %s1510_s15 }
 0x3e2   : > { %v883_v15 = vpop.permute.xlu0 %882 }
 0x3e3   : > { %v886_v16 = vmax.f32 %v880_v12, %v883_v15 }
 0x3e5   : > { %v888_v17 = vsub.f32 %v862_v1, %v886_v16 }
 0x3e6   : > { %v885_v18 = vpop.permute.xlu1 %884 }
 0x3e7   : > { %v890_v20 = vmul.f32 1.442695, %v888_v17  ;;  %v887_v23 = vmax.f32 %v881_v14, %v885_v18 }
 0x3e9   : > { %1373 = vpow2.f32 %v890_v20  ;;  %v889_v25 = vsub.f32 %v863_v2, %v887_v23 }
 0x3eb   : > { %v892_v26 = vmul.f32 1.442695, %v889_v25 }
 0x3ed   : > { %1375 = vpow2.f32 %v892_v26 }
 0x3f6   : > { %v1374_v27 = vpop.eup %1373 }
 0x3f7   : > { %894 = vrot.lane.b32.xlu0 %v1374_v27, %s1507_s12 }
 0x3fa   : > { %v1376_v28 = vpop.eup %1375 }
 0x3fb   : > { %896 = vrot.lane.b32.xlu1 %v1376_v28, %s1507_s12 }
 0x469   : > { %v895_v29 = vpop.permute.xlu0 %894 }
 0x46a   : > { %v898_v30 = vadd.f32 %v1374_v27, %v895_v29 }
 0x46c   : > { %900 = vrot.lane.b32.xlu0 %v898_v30, %s1508_s13 }
 0x46d   : > { %v897_v31 = vpop.permute.xlu1 %896 }
 0x46e   : > { %v899_v32 = vadd.f32 %v1376_v28, %v897_v31 }
 0x470   : > { %902 = vrot.lane.b32.xlu1 %v899_v32, %s1508_s13 }
 0x4de   : > { %v901_v33 = vpop.permute.xlu0 %900 }
 0x4df   : > { %v904_v34 = vadd.f32 %v901_v33, %v898_v30 }
 0x4e1   : > { %906 = vrot.lane.b32.xlu0 %v904_v34, %s1509_s14 }
 0x4e2   : > { %v903_v35 = vpop.permute.xlu1 %902 }
 0x4e3   : > { %v905_v36 = vadd.f32 %v903_v35, %v899_v32 }
 0x4e5   : > { %908 = vrot.lane.b32.xlu1 %v905_v36, %s1509_s14 }
 0x553   : > { %v907_v37 = vpop.permute.xlu0 %906 }
 0x554   : > { %v910_v38 = vadd.f32 %v907_v37, %v904_v34 }
 0x556   : > { %912 = vrot.lane.b32.xlu0 %v910_v38, %s1510_s15 }
 0x557   : > { %v909_v39 = vpop.permute.xlu1 %908 }
 0x558   : > { %v911_v40 = vadd.f32 %v909_v39, %v905_v36 }
 0x55a   : > { %914 = vrot.lane.b32.xlu1 %v911_v40, %s1510_s15 }
 0x5c8   : > { %v913_v41 = vpop.permute.xlu0 %912 }
 0x5c9   : > { %v916_v42 = vadd.f32 %v913_v41, %v910_v38 }
 0x5cb   : > { %1377 = vrcp.f32 %v916_v42 }
 0x5cc   : > { %v915_v43 = vpop.permute.xlu1 %914 }
 0x5cd   : > { %v917_v44 = vadd.f32 %v915_v43, %v911_v40 }
 0x5cf   : > { %1379 = vrcp.f32 %v917_v44 }
 0x5d8   : > { %v1378_v45 = vpop.eup %1377 }
 0x5d9   : > { %v920_v46 = vmul.f32 %v1378_v45, %v1374_v27 }
 0x5db   : > { %v922_v47 = vmul.f32 %v920_v46, %v549_v24 }
 0x5dc   : > { %v1380_v48 = vpop.eup %1379 }
 0x5dd   : > { %v921_v49 = vmul.f32 %v1380_v48, %v1376_v28  ;;  %924 = vst [vmem:[%s247_s25] sm:$0xff] %v922_v47 }
 0x5df   : > { %v923_v50 = vmul.f32 %v921_v49, %v550_v21 }
 0x5e1   : > { %925 = vst [vmem:[%s247_s25 + $0x8] sm:$0xff] %v923_v50 }
 0x5e2   : > { %1446 = shalt.err (!%p1443_p3)
}
 0x5e3   : > { %s1447_s13 = scalar_lea.hbm %s1708_s7, 256  ;;  %s1451_s16 = scalar_lea.hbm %s1760_s5, 512 }
 0x5e4   : > { %p1448_p2 = scmp.ne.s32.totalorder %s1708_s7, %s1447_s13  ;;  %p1452_p7 = scmp.lt.s32.totalorder %s1708_s7, %s1760_s5 }
 0x5e5   : > { %p1453_p6 = scmp.lt.s32.totalorder %s1451_s16, %s1447_s13 }
 0x5e6   : > { %p1449_p4 = pnand %p1448_p2, %p1581_p5 }
 0x5e7   : > { %p1454_p9 = por %p1453_p6, %p1452_p7 }
 0x5e8   : > { %p1450_p13 = pneg %p1449_p4 }
 0x5ea   : > { %p1455_p10 = pnand %p1454_p9, %p1450_p13 }
 0x5ec   : > { %1458 = shalt.err (!%p1455_p10)
}
 0x5ed   : > { %s1512_s25 = smov 128  }
 0x5ee   : > { %1314 = dma.vmem_to_hbm [thread:$0]  (%p1581_p5), %s1712_s26, 256, %s1708_s7, %s1714_s22, %s1512_s25, %s1512_s25, %s1507_s12  }
 0x5ef PF: > { %p1331_p12 = scmp.ge.s32.totalorder %s1501_s21, 2  ;;  %s955_s30 = sand.u32 1, %s1489_s18  }
 0x5f0   : > { %p1770_p8 = scmp.ne.s32.totalorder %s1763_s29, 0  ;;  %s956_s6 = scalar_lea.sflag [#allocation4], %s955_s30 }
 0x5f2   : > { %p1324_p11 = pnand %p1331_p12, %p1770_p8 }
 0x5f4   : > { %p1325_p0 = pneg %p1324_p11 }
 0x5f6   : > { %1484 = dma.done.wait (%p1325_p0), %s956_s6, 256  }
 0x5f7   : > { %1486 = vsyncadd (%p1325_p0), %s956_s6, 4294967040  ;;  %p17_p1 = scmp.ge.s32.totalorder %s1568_s24, 4   ;;  %s1771_s18 = smov %s1493_s19 }
 0x5f8   : > { %s1772_s19 = smov %s1497_s20  ;;  %s1773_s20 = smov %s1579_s27 }
 0x5f9   : > { %s1774_s21 = smov %s1568_s24  ;;  %19 = sbr.rel (!%p17_p1) target bundleno = 5 (0x5), region = 88 }
 0x5fe   :  { %961 = vsyncpa [#allocation3], 1 }
 0x5ff   :  { %963 = vsyncpa [#allocation3 + $0x1], 1 }
 0x600   :  { %964 = vsyncpa [#allocation6], 1 }
 0x601   :  { %965 = vsyncpa [#allocation4], 1 }
 0x602   :  { %967 = vsyncpa [#allocation4 + $0x1], 1 }

</bundles_post_ra>
